<compile_context>
chip_gen: v7x
topology: tpu7x:2x2x1
jax: 0.10.0
libtpu: 0.0.40
codegen_flags: <defaults>
</compile_context>

<pallas_src>
import functools

import numpy as np
import jax
import jax.numpy as jnp
from jax.experimental import pallas as pl
from jax.experimental.pallas import tpu as pltpu

CURV = 1.0          # Poincare ball curvature c
_EPS = 1e-12
_BALL_EPS = 1e-4    # projection margin to stay strictly inside the ball
_BN_EPS = 1e-5
_SUBLANE = 8
_MAX_TAN = float(np.arctanh(1.0 - _BALL_EPS))   # tangent-norm clamp (divided by sqrt(c))


# ---------------------------------------------------------------------------
# hyperbolic math helpers (used INSIDE the kernel; channel/manifold axis = 0)
# ---------------------------------------------------------------------------
def _artanh(x):
    x = jnp.clip(x, -1.0 + 1e-7, 1.0 - 1e-7)
    return 0.5 * jnp.log((1.0 + x) / (1.0 - x))


def _norm_and_inv(x):
    # (||x||, 1/||x||) along the channel axis; rsqrt + multiply instead of sqrt + divide
    sq = jnp.maximum(jnp.sum(x * x, axis=0, keepdims=True), _EPS * _EPS)
    inv_n = jax.lax.rsqrt(sq)
    return sq * inv_n, inv_n


def _logmap0(x, c):
    sc = c ** 0.5
    n, inv_n = _norm_and_inv(x)
    return (_artanh(sc * n) * (inv_n * (1.0 / sc))) * x


def _expmap0_proj(v, c):
    # expmap0 fused with ball projection: clamping tanh(sc*||v||) at (1 - eps) is
    # numerically identical to projecting the output norm at (1 - eps)/sqrt(c).
    sc = c ** 0.5
    n, inv_n = _norm_and_inv(v)
    t = jnp.minimum(jnp.tanh(sc * n), 1.0 - _BALL_EPS)
    return (t * (inv_n * (1.0 / sc))) * v


def _tan_clamp(v, c):
    # == logmap0(project(expmap0(v))): the exp/log round trip cancels and the ball
    # projection becomes a tangent-norm clamp at artanh(1 - eps)/sqrt(c).
    max_n = _MAX_TAN / (c ** 0.5)
    n, inv_n = _norm_and_inv(v)
    return jnp.where(n > max_n, v * (max_n * inv_n), v)


def _project(x, c):
    maxn = (1.0 - _BALL_EPS) / (c ** 0.5)
    n, inv_n = _norm_and_inv(x)
    return jnp.where(n > maxn, x * (maxn * inv_n), x)


# ---------------------------------------------------------------------------
# single fused Pallas kernel for the whole residual block
# ---------------------------------------------------------------------------
def _residual_block_kernel(x_ref, m_ref,
                           w1_ref, b1_ref, g1_ref, be1_ref,
                           w2_ref, b2_ref, g2_ref, be2_ref,
                           o_ref, *, c, n_pts, width):
    # tap order matches the weight layout: k = (dy + 1) * 3 + (dx + 1)
    shifts = [dy * width + dx for dy in (-1, 0, 1) for dx in (-1, 0, 1)]

    def tangent_conv(t, w_ref, b_ref):
        # 3x3 conv in tangent space, stride 1, padding 1. Each tap is a lane-axis roll
        # of the resident (Cp, N) tensor, masked at image borders, and accumulated
        # straight through a small MXU matmul (no im2col patch matrix materialized).
        acc = jnp.zeros_like(t)
        for k, s in enumerate(shifts):
            if s == 0:
                tap = t                                        # center tap: mask == 1
            else:
                tap = pltpu.roll(t, shift=(-s) % n_pts, axis=1) * m_ref[k:k + 1, :]
            acc = acc + jnp.dot(w_ref[k], tap, preferred_element_type=jnp.float32)
        return acc + b_ref[...]

    def tangent_bn(t, g_ref, be_ref):
        # tangent-space BN at the origin; stats over ALL N = B*H*W points (exact since
        # the whole problem lives in this single block). var = E[t^2] - E[t]^2 keeps
        # the two lane reductions independent.
        mean = jnp.mean(t, axis=1, keepdims=True)
        msq = jnp.mean(t * t, axis=1, keepdims=True)
        var = jnp.maximum(msq - mean * mean, 0.0)
        return (t - mean) * (jax.lax.rsqrt(var + _BN_EPS) * g_ref[...]) + be_ref[...]

    x = x_ref[...]                                             # (Cp, N) ball input / residual

    # conv1 -> bn1 -> HReLU   (conv output stays in tangent space straight into BN)
    t = tangent_conv(_logmap0(x, c), w1_ref, b1_ref)
    t = tangent_bn(_tan_clamp(t, c), g1_ref, be1_ref)
    y = jnp.maximum(_expmap0_proj(t, c), 0.0)                  # HReLU on ball coordinates

    # conv2 -> bn2
    t = tangent_conv(_logmap0(y, c), w2_ref, b2_ref)
    t = tangent_bn(_tan_clamp(t, c), g2_ref, be2_ref)
    a = _expmap0_proj(t, c)                                    # (Cp, N) ball point

    # mobius_add(out, residual), then trailing HReLU
    r = x
    a2 = jnp.sum(a * a, axis=0, keepdims=True)
    r2 = jnp.sum(r * r, axis=0, keepdims=True)
    ar = jnp.sum(a * r, axis=0, keepdims=True)
    num = (1.0 + 2.0 * c * ar + c * r2) * a + (1.0 - c * a2) * r
    den = jnp.maximum(1.0 + 2.0 * c * ar + (c * c) * a2 * r2, _EPS)
    z = _project(num * pl.reciprocal(den, approx=True), c)
    o_ref[...] = jnp.maximum(z, 0.0)


# ---------------------------------------------------------------------------
# wrapper glue (layout plumbing only; all compute runs in the fused kernel)
# ---------------------------------------------------------------------------
def _full_spec(shape):
    return pl.BlockSpec(shape, lambda i, _n=len(shape): (0,) * _n)


def _round_up(x, m):
    return ((x + m - 1) // m) * m


def _boundary_masks(B, H, W):
    # (9, N) lane-dense masks: mask[k, n] == 1 iff the k-th 3x3 tap of output pixel n
    # stays inside its image (also kills batch wraparound of the lane roll).
    N = B * H * W
    n = np.arange(N)
    h = (n // W) % H
    w = n % W
    masks = np.zeros((9, N), np.float32)
    k = 0
    for dy in (-1, 0, 1):
        for dx in (-1, 0, 1):
            ok = (h + dy >= 0) & (h + dy < H) & (w + dx >= 0) & (w + dx < W)
            masks[k] = ok.astype(np.float32)
            k += 1
    return jnp.asarray(masks)


def _conv_weight_taps(w, cp):
    # (Cout, Cin, 3, 3) -> (9, Cp, Cp); taps[k][co, ci] = w[co, ci, kh, kw], k = kh*3+kw.
    # Zero channel padding keeps padded channels exactly zero downstream.
    cout, cin, kh, kw = w.shape
    taps = jnp.transpose(w, (2, 3, 0, 1)).reshape(kh * kw, cout, cin)
    return jnp.pad(taps, ((0, 0), (0, cp - cout), (0, cp - cin)))


def _chan_col(v, cp):
    # (C,) -> (Cp, 1)
    return jnp.pad(v, (0, cp - v.shape[0])).reshape(cp, 1)


def poincare_residual_block(x, params, c=CURV):
    """Forward pass of PoincareResidualBlock (stride=1, downsample=None), NHWC input."""
    B, H, W, C = x.shape
    N = B * H * W
    cp = _round_up(max(C, _SUBLANE), _SUBLANE)

    # (B,H,W,C) -> lane-dense (Cp, N): channels on sublanes, flattened pixels on lanes.
    # TODO(synk): when chaining multiple blocks, keep activations in this layout across
    #             blocks (transpose once at network entry/exit) to amortize launch cost.
    xt = jnp.pad(x.reshape(N, C), ((0, 0), (0, cp - C))).T

    args = (
        xt, _boundary_masks(B, H, W),
        _conv_weight_taps(params["w1"], cp), _chan_col(params["b1"], cp),
        _chan_col(params["g1"], cp), _chan_col(params["be1"], cp),
        _conv_weight_taps(params["w2"], cp), _chan_col(params["b2"], cp),
        _chan_col(params["g2"], cp), _chan_col(params["be2"], cp),
    )

    kernel = functools.partial(_residual_block_kernel, c=c, n_pts=N, width=W)
    # NOTE: single block / grid=(1,) is intentional: at this size the workload is
    # launch-bound, everything fits in VMEM on v5e/v6e/v7x, and the tangent-space BN
    # needs global statistics (row-tiling would require a two-pass reduction).
    out = pl.pallas_call(
        kernel,
        out_shape=jax.ShapeDtypeStruct((cp, N), jnp.float32),
        grid=(1,),
        in_specs=[_full_spec(a.shape) for a in args],
        out_specs=_full_spec((cp, N)),
        compiler_params=pltpu.CompilerParams(
            dimension_semantics=("arbitrary",),
        ),
        cost_estimate=pl.CostEstimate(
            flops=int(2 * 9 * 2 * cp * cp * N + 60 * cp * N),   # 2 convs + elementwise
            transcendentals=int(14 * N),                         # tanh/log/rsqrt/recip
            bytes_accessed=int(sum(int(a.size) * 4 for a in args) + cp * N * 4),
        ),
    )(*args)

    return out.T[:, :C].reshape(B, H, W, C)


# ---------------------------------------------------------------------------
# main
# ---------------------------------------------------------------------------
if __name__ == "__main__":
    key = jax.random.PRNGKey(0)
    B, C, H, W = 2, 4, 16, 16          # in_channels = out_channels = 4
    k1, k2, k3 = jax.random.split(key, 3)

    # input on the Poincare ball (expmap0 of a small tangent vector), NHWC layout
    v = 0.3 * jax.random.normal(k1, (B, H, W, C), dtype=jnp.float32)
    vn = jnp.maximum(jnp.linalg.norm(v, axis=-1, keepdims=True), 1e-12)
    x = jnp.tanh(vn) * v / vn

    params = dict(
        w1=0.2 * jax.random.normal(k2, (C, C, 3, 3), dtype=jnp.float32),
        b1=jnp.zeros((C,), jnp.float32),
        g1=jnp.ones((C,), jnp.float32),
        be1=jnp.zeros((C,), jnp.float32),
        w2=0.2 * jax.random.normal(k3, (C, C, 3, 3), dtype=jnp.float32),
        b2=jnp.zeros((C,), jnp.float32),
        g2=jnp.ones((C,), jnp.float32),
        be2=jnp.zeros((C,), jnp.float32),
    )

    fwd = jax.jit(functools.partial(poincare_residual_block, c=CURV))
    out = fwd(x, params)
    jax.block_until_ready(out)

    assert out.shape == (B, H, W, C)
    assert bool(jnp.all(jnp.isfinite(out)))
    # output must remain inside the unit ball (per-pixel channel norm < 1)
    assert bool(jnp.all(jnp.linalg.norm(out, axis=-1) < 1.0))
    print("KERNEL_OK")
</pallas_src>

<mosaic_0001>
module attributes {stable_mosaic.version = 11 : i64} {
  func.func @_residual_block_kernel(%arg0: i32, %arg1: memref<8x512xf32, #tpu.memory_space<vmem>>, %arg2: memref<9x512xf32, #tpu.memory_space<vmem>>, %arg3: memref<9x8x8xf32, #tpu.memory_space<vmem>>, %arg4: memref<8x1xf32, #tpu.memory_space<vmem>>, %arg5: memref<8x1xf32, #tpu.memory_space<vmem>>, %arg6: memref<8x1xf32, #tpu.memory_space<vmem>>, %arg7: memref<9x8x8xf32, #tpu.memory_space<vmem>>, %arg8: memref<8x1xf32, #tpu.memory_space<vmem>>, %arg9: memref<8x1xf32, #tpu.memory_space<vmem>>, %arg10: memref<8x1xf32, #tpu.memory_space<vmem>>, %arg11: memref<8x512xf32, #tpu.memory_space<vmem>>) attributes {dimension_semantics = [#tpu.dimension_semantics<arbitrary>], iteration_bounds = array<i64: 1>, scalar_prefetch = 0 : i64, scratch_operands = 0 : i64, tpu.core_type = #tpu.core_type<tc>, window_params = [{pipeline_mode = #tpu.pipeline_mode<synchronous>, transform_indices = @transform_0, window_bounds = array<i64: 8, 512>}, {pipeline_mode = #tpu.pipeline_mode<synchronous>, transform_indices = @transform_1, window_bounds = array<i64: 9, 512>}, {pipeline_mode = #tpu.pipeline_mode<synchronous>, transform_indices = @transform_2, window_bounds = array<i64: 9, 8, 8>}, {pipeline_mode = #tpu.pipeline_mode<synchronous>, transform_indices = @transform_3, window_bounds = array<i64: 8, 1>}, {pipeline_mode = #tpu.pipeline_mode<synchronous>, transform_indices = @transform_4, window_bounds = array<i64: 8, 1>}, {pipeline_mode = #tpu.pipeline_mode<synchronous>, transform_indices = @transform_5, window_bounds = array<i64: 8, 1>}, {pipeline_mode = #tpu.pipeline_mode<synchronous>, transform_indices = @transform_6, window_bounds = array<i64: 9, 8, 8>}, {pipeline_mode = #tpu.pipeline_mode<synchronous>, transform_indices = @transform_7, window_bounds = array<i64: 8, 1>}, {pipeline_mode = #tpu.pipeline_mode<synchronous>, transform_indices = @transform_8, window_bounds = array<i64: 8, 1>}, {pipeline_mode = #tpu.pipeline_mode<synchronous>, transform_indices = @transform_9, window_bounds = array<i64: 8, 1>}, {pipeline_mode = #tpu.pipeline_mode<synchronous>, transform_indices = @transform_10, window_bounds = array<i64: 8, 512>}]} {
    %c0 = arith.constant 0 : index
    %c0_0 = arith.constant 0 : index
    %0 = vector.load %arg1[%c0, %c0_0] : memref<8x512xf32, #tpu.memory_space<vmem>>, vector<8x512xf32>
    %1 = arith.mulf %0, %0 : vector<8x512xf32>
    %cst = arith.constant dense<0.000000e+00> : vector<512xf32>
    %2 = vector.multi_reduction <add>, %1, %cst [0] : vector<8x512xf32> to vector<512xf32>
    %3 = vector.shape_cast %2 : vector<512xf32> to vector<1x512xf32>
    %cst_1 = arith.constant 1.000000e-24 : f32
    %4 = vector.broadcast %cst_1 : f32 to vector<1x512xf32>
    %5 = arith.maximumf %3, %4 : vector<1x512xf32>
    %6 = math.rsqrt %5 : vector<1x512xf32>
    %7 = arith.mulf %5, %6 : vector<1x512xf32>
    %cst_2 = arith.constant 1.000000e+00 : f32
    %8 = vector.broadcast %cst_2 : f32 to vector<1x512xf32>
    %9 = arith.mulf %8, %7 : vector<1x512xf32>
    %cst_3 = arith.constant -0.99999988 : f32
    %cst_4 = arith.constant 0.99999988 : f32
    %10 = vector.broadcast %cst_3 : f32 to vector<1x512xf32>
    %11 = arith.maximumf %10, %9 : vector<1x512xf32>
    %12 = vector.broadcast %cst_4 : f32 to vector<1x512xf32>
    %13 = arith.minimumf %12, %11 : vector<1x512xf32>
    %cst_5 = arith.constant 1.000000e+00 : f32
    %14 = vector.broadcast %cst_5 : f32 to vector<1x512xf32>
    %15 = arith.addf %14, %13 : vector<1x512xf32>
    %cst_6 = arith.constant 1.000000e+00 : f32
    %16 = vector.broadcast %cst_6 : f32 to vector<1x512xf32>
    %17 = arith.subf %16, %13 : vector<1x512xf32>
    %18 = arith.divf %15, %17 : vector<1x512xf32>
    %19 = math.log %18 : vector<1x512xf32>
    %cst_7 = arith.constant 5.000000e-01 : f32
    %20 = vector.broadcast %cst_7 : f32 to vector<1x512xf32>
    %21 = arith.mulf %20, %19 : vector<1x512xf32>
    %cst_8 = arith.constant 1.000000e+00 : f32
    %22 = vector.broadcast %cst_8 : f32 to vector<1x512xf32>
    %23 = arith.mulf %6, %22 : vector<1x512xf32>
    %24 = arith.mulf %21, %23 : vector<1x512xf32>
    %25 = vector.broadcast %24 : vector<1x512xf32> to vector<8x512xf32>
    %26 = arith.mulf %25, %0 : vector<8x512xf32>
    %cst_9 = arith.constant 0.000000e+00 : f32
    %27 = vector.broadcast %cst_9 : f32 to vector<8x512xf32>
    %c17_i32 = arith.constant 17 : i32
    %28 = tpu.dynamic_rotate %26 by %c17_i32 dim 1 : vector<8x512xf32>, i32 -> vector<8x512xf32>
    %c0_10 = arith.constant 0 : index
    %c0_11 = arith.constant 0 : index
    %29 = vector.load %arg2[%c0_10, %c0_11] : memref<9x512xf32, #tpu.memory_space<vmem>>, vector<1x512xf32>
    %30 = vector.broadcast %29 : vector<1x512xf32> to vector<8x512xf32>
    %31 = arith.mulf %28, %30 : vector<8x512xf32>
    %c0_12 = arith.constant 0 : index
    %c0_13 = arith.constant 0 : index
    %c0_14 = arith.constant 0 : index
    %32 = vector.load %arg3[%c0_12, %c0_13, %c0_14] : memref<9x8x8xf32, #tpu.memory_space<vmem>>, vector<1x8x8xf32>
    %33 = vector.shape_cast %32 : vector<1x8x8xf32> to vector<8x8xf32>
    %cst_15 = arith.constant dense<0.000000e+00> : vector<8x512xf32>
    %34 = tpu.matmul %33, %31, %cst_15 {dimension_numbers = #tpu.dot_dimension_numbers<[1], [0], [0], [1], [0, 0, 1, 1], [], []>} : vector<8x8xf32>, vector<8x512xf32>, vector<8x512xf32> -> vector<8x512xf32>
    %35 = arith.addf %27, %34 : vector<8x512xf32>
    %c16_i32 = arith.constant 16 : i32
    %36 = tpu.dynamic_rotate %26 by %c16_i32 dim 1 : vector<8x512xf32>, i32 -> vector<8x512xf32>
    %c1 = arith.constant 1 : index
    %c0_16 = arith.constant 0 : index
    %37 = vector.load %arg2[%c1, %c0_16] : memref<9x512xf32, #tpu.memory_space<vmem>>, vector<1x512xf32>
    %38 = vector.broadcast %37 : vector<1x512xf32> to vector<8x512xf32>
    %39 = arith.mulf %36, %38 : vector<8x512xf32>
    %c1_17 = arith.constant 1 : index
    %c0_18 = arith.constant 0 : index
    %c0_19 = arith.constant 0 : index
    %40 = vector.load %arg3[%c1_17, %c0_18, %c0_19] : memref<9x8x8xf32, #tpu.memory_space<vmem>>, vector<1x8x8xf32>
    %41 = vector.shape_cast %40 : vector<1x8x8xf32> to vector<8x8xf32>
    %cst_20 = arith.constant dense<0.000000e+00> : vector<8x512xf32>
    %42 = tpu.matmul %41, %39, %cst_20 {dimension_numbers = #tpu.dot_dimension_numbers<[1], [0], [0], [1], [0, 0, 1, 1], [], []>} : vector<8x8xf32>, vector<8x512xf32>, vector<8x512xf32> -> vector<8x512xf32>
    %43 = arith.addf %35, %42 : vector<8x512xf32>
    %c15_i32 = arith.constant 15 : i32
    %44 = tpu.dynamic_rotate %26 by %c15_i32 dim 1 : vector<8x512xf32>, i32 -> vector<8x512xf32>
    %c2 = arith.constant 2 : index
    %c0_21 = arith.constant 0 : index
    %45 = vector.load %arg2[%c2, %c0_21] : memref<9x512xf32, #tpu.memory_space<vmem>>, vector<1x512xf32>
    %46 = vector.broadcast %45 : vector<1x512xf32> to vector<8x512xf32>
    %47 = arith.mulf %44, %46 : vector<8x512xf32>
    %c2_22 = arith.constant 2 : index
    %c0_23 = arith.constant 0 : index
    %c0_24 = arith.constant 0 : index
    %48 = vector.load %arg3[%c2_22, %c0_23, %c0_24] : memref<9x8x8xf32, #tpu.memory_space<vmem>>, vector<1x8x8xf32>
    %49 = vector.shape_cast %48 : vector<1x8x8xf32> to vector<8x8xf32>
    %cst_25 = arith.constant dense<0.000000e+00> : vector<8x512xf32>
    %50 = tpu.matmul %49, %47, %cst_25 {dimension_numbers = #tpu.dot_dimension_numbers<[1], [0], [0], [1], [0, 0, 1, 1], [], []>} : vector<8x8xf32>, vector<8x512xf32>, vector<8x512xf32> -> vector<8x512xf32>
    %51 = arith.addf %43, %50 : vector<8x512xf32>
    %c1_i32 = arith.constant 1 : i32
    %52 = tpu.dynamic_rotate %26 by %c1_i32 dim 1 : vector<8x512xf32>, i32 -> vector<8x512xf32>
    %c3 = arith.constant 3 : index
    %c0_26 = arith.constant 0 : index
    %53 = vector.load %arg2[%c3, %c0_26] : memref<9x512xf32, #tpu.memory_space<vmem>>, vector<1x512xf32>
    %54 = vector.broadcast %53 : vector<1x512xf32> to vector<8x512xf32>
    %55 = arith.mulf %52, %54 : vector<8x512xf32>
    %c3_27 = arith.constant 3 : index
    %c0_28 = arith.constant 0 : index
    %c0_29 = arith.constant 0 : index
    %56 = vector.load %arg3[%c3_27, %c0_28, %c0_29] : memref<9x8x8xf32, #tpu.memory_space<vmem>>, vector<1x8x8xf32>
    %57 = vector.shape_cast %56 : vector<1x8x8xf32> to vector<8x8xf32>
    %cst_30 = arith.constant dense<0.000000e+00> : vector<8x512xf32>
    %58 = tpu.matmul %57, %55, %cst_30 {dimension_numbers = #tpu.dot_dimension_numbers<[1], [0], [0], [1], [0, 0, 1, 1], [], []>} : vector<8x8xf32>, vector<8x512xf32>, vector<8x512xf32> -> vector<8x512xf32>
    %59 = arith.addf %51, %58 : vector<8x512xf32>
    %c4 = arith.constant 4 : index
    %c0_31 = arith.constant 0 : index
    %c0_32 = arith.constant 0 : index
    %60 = vector.load %arg3[%c4, %c0_31, %c0_32] : memref<9x8x8xf32, #tpu.memory_space<vmem>>, vector<1x8x8xf32>
    %61 = vector.shape_cast %60 : vector<1x8x8xf32> to vector<8x8xf32>
    %cst_33 = arith.constant dense<0.000000e+00> : vector<8x512xf32>
    %62 = tpu.matmul %61, %26, %cst_33 {dimension_numbers = #tpu.dot_dimension_numbers<[1], [0], [0], [1], [0, 0, 1, 1], [], []>} : vector<8x8xf32>, vector<8x512xf32>, vector<8x512xf32> -> vector<8x512xf32>
    %63 = arith.addf %59, %62 : vector<8x512xf32>
    %c511_i32 = arith.constant 511 : i32
    %64 = tpu.dynamic_rotate %26 by %c511_i32 dim 1 : vector<8x512xf32>, i32 -> vector<8x512xf32>
    %c5 = arith.constant 5 : index
    %c0_34 = arith.constant 0 : index
    %65 = vector.load %arg2[%c5, %c0_34] : memref<9x512xf32, #tpu.memory_space<vmem>>, vector<1x512xf32>
    %66 = vector.broadcast %65 : vector<1x512xf32> to vector<8x512xf32>
    %67 = arith.mulf %64, %66 : vector<8x512xf32>
    %c5_35 = arith.constant 5 : index
    %c0_36 = arith.constant 0 : index
    %c0_37 = arith.constant 0 : index
    %68 = vector.load %arg3[%c5_35, %c0_36, %c0_37] : memref<9x8x8xf32, #tpu.memory_space<vmem>>, vector<1x8x8xf32>
    %69 = vector.shape_cast %68 : vector<1x8x8xf32> to vector<8x8xf32>
    %cst_38 = arith.constant dense<0.000000e+00> : vector<8x512xf32>
    %70 = tpu.matmul %69, %67, %cst_38 {dimension_numbers = #tpu.dot_dimension_numbers<[1], [0], [0], [1], [0, 0, 1, 1], [], []>} : vector<8x8xf32>, vector<8x512xf32>, vector<8x512xf32> -> vector<8x512xf32>
    %71 = arith.addf %63, %70 : vector<8x512xf32>
    %c497_i32 = arith.constant 497 : i32
    %72 = tpu.dynamic_rotate %26 by %c497_i32 dim 1 : vector<8x512xf32>, i32 -> vector<8x512xf32>
    %c6 = arith.constant 6 : index
    %c0_39 = arith.constant 0 : index
    %73 = vector.load %arg2[%c6, %c0_39] : memref<9x512xf32, #tpu.memory_space<vmem>>, vector<1x512xf32>
    %74 = vector.broadcast %73 : vector<1x512xf32> to vector<8x512xf32>
    %75 = arith.mulf %72, %74 : vector<8x512xf32>
    %c6_40 = arith.constant 6 : index
    %c0_41 = arith.constant 0 : index
    %c0_42 = arith.constant 0 : index
    %76 = vector.load %arg3[%c6_40, %c0_41, %c0_42] : memref<9x8x8xf32, #tpu.memory_space<vmem>>, vector<1x8x8xf32>
    %77 = vector.shape_cast %76 : vector<1x8x8xf32> to vector<8x8xf32>
    %cst_43 = arith.constant dense<0.000000e+00> : vector<8x512xf32>
    %78 = tpu.matmul %77, %75, %cst_43 {dimension_numbers = #tpu.dot_dimension_numbers<[1], [0], [0], [1], [0, 0, 1, 1], [], []>} : vector<8x8xf32>, vector<8x512xf32>, vector<8x512xf32> -> vector<8x512xf32>
    %79 = arith.addf %71, %78 : vector<8x512xf32>
    %c496_i32 = arith.constant 496 : i32
    %80 = tpu.dynamic_rotate %26 by %c496_i32 dim 1 : vector<8x512xf32>, i32 -> vector<8x512xf32>
    %c7 = arith.constant 7 : index
    %c0_44 = arith.constant 0 : index
    %81 = vector.load %arg2[%c7, %c0_44] : memref<9x512xf32, #tpu.memory_space<vmem>>, vector<1x512xf32>
    %82 = vector.broadcast %81 : vector<1x512xf32> to vector<8x512xf32>
    %83 = arith.mulf %80, %82 : vector<8x512xf32>
    %c7_45 = arith.constant 7 : index
    %c0_46 = arith.constant 0 : index
    %c0_47 = arith.constant 0 : index
    %84 = vector.load %arg3[%c7_45, %c0_46, %c0_47] : memref<9x8x8xf32, #tpu.memory_space<vmem>>, vector<1x8x8xf32>
    %85 = vector.shape_cast %84 : vector<1x8x8xf32> to vector<8x8xf32>
    %cst_48 = arith.constant dense<0.000000e+00> : vector<8x512xf32>
    %86 = tpu.matmul %85, %83, %cst_48 {dimension_numbers = #tpu.dot_dimension_numbers<[1], [0], [0], [1], [0, 0, 1, 1], [], []>} : vector<8x8xf32>, vector<8x512xf32>, vector<8x512xf32> -> vector<8x512xf32>
    %87 = arith.addf %79, %86 : vector<8x512xf32>
    %c495_i32 = arith.constant 495 : i32
    %88 = tpu.dynamic_rotate %26 by %c495_i32 dim 1 : vector<8x512xf32>, i32 -> vector<8x512xf32>
    %c8 = arith.constant 8 : index
    %c0_49 = arith.constant 0 : index
    %89 = vector.load %arg2[%c8, %c0_49] : memref<9x512xf32, #tpu.memory_space<vmem>>, vector<1x512xf32>
    %90 = vector.broadcast %89 : vector<1x512xf32> to vector<8x512xf32>
    %91 = arith.mulf %88, %90 : vector<8x512xf32>
    %c8_50 = arith.constant 8 : index
    %c0_51 = arith.constant 0 : index
    %c0_52 = arith.constant 0 : index
    %92 = vector.load %arg3[%c8_50, %c0_51, %c0_52] : memref<9x8x8xf32, #tpu.memory_space<vmem>>, vector<1x8x8xf32>
    %93 = vector.shape_cast %92 : vector<1x8x8xf32> to vector<8x8xf32>
    %cst_53 = arith.constant dense<0.000000e+00> : vector<8x512xf32>
    %94 = tpu.matmul %93, %91, %cst_53 {dimension_numbers = #tpu.dot_dimension_numbers<[1], [0], [0], [1], [0, 0, 1, 1], [], []>} : vector<8x8xf32>, vector<8x512xf32>, vector<8x512xf32> -> vector<8x512xf32>
    %95 = arith.addf %87, %94 : vector<8x512xf32>
    %c0_54 = arith.constant 0 : index
    %c0_55 = arith.constant 0 : index
    %96 = vector.load %arg4[%c0_54, %c0_55] : memref<8x1xf32, #tpu.memory_space<vmem>>, vector<8x1xf32>
    %97 = vector.broadcast %96 : vector<8x1xf32> to vector<8x512xf32>
    %98 = arith.addf %95, %97 : vector<8x512xf32>
    %99 = arith.mulf %98, %98 : vector<8x512xf32>
    %cst_56 = arith.constant dense<0.000000e+00> : vector<512xf32>
    %100 = vector.multi_reduction <add>, %99, %cst_56 [0] : vector<8x512xf32> to vector<512xf32>
    %101 = vector.shape_cast %100 : vector<512xf32> to vector<1x512xf32>
    %cst_57 = arith.constant 1.000000e-24 : f32
    %102 = vector.broadcast %cst_57 : f32 to vector<1x512xf32>
    %103 = arith.maximumf %101, %102 : vector<1x512xf32>
    %104 = math.rsqrt %103 : vector<1x512xf32>
    %105 = arith.mulf %103, %104 : vector<1x512xf32>
    %cst_58 = arith.constant 4.95171881 : f32
    %106 = vector.broadcast %cst_58 : f32 to vector<1x512xf32>
    %107 = arith.cmpf ogt, %105, %106 : vector<1x512xf32>
    %cst_59 = arith.constant 4.95171881 : f32
    %108 = vector.broadcast %cst_59 : f32 to vector<1x512xf32>
    %109 = arith.mulf %108, %104 : vector<1x512xf32>
    %110 = vector.broadcast %109 : vector<1x512xf32> to vector<8x512xf32>
    %111 = arith.mulf %98, %110 : vector<8x512xf32>
    %112 = vector.shape_cast %107 : vector<1x512xi1> to vector<1x512xi1>
    %113 = vector.broadcast %112 : vector<1x512xi1> to vector<8x512xi1>
    %114 = arith.select %113, %111, %98 : vector<8x512xi1>, vector<8x512xf32>
    %cst_60 = arith.constant dense<0.000000e+00> : vector<8xf32>
    %115 = vector.multi_reduction <add>, %114, %cst_60 [1] : vector<8x512xf32> to vector<8xf32>
    %116 = vector.shape_cast %115 : vector<8xf32> to vector<8x1xf32>
    %cst_61 = arith.constant 5.120000e+02 : f32
    %117 = vector.broadcast %cst_61 : f32 to vector<8x1xf32>
    %118 = arith.divf %116, %117 : vector<8x1xf32>
    %119 = arith.mulf %114, %114 : vector<8x512xf32>
    %cst_62 = arith.constant dense<0.000000e+00> : vector<8xf32>
    %120 = vector.multi_reduction <add>, %119, %cst_62 [1] : vector<8x512xf32> to vector<8xf32>
    %121 = vector.shape_cast %120 : vector<8xf32> to vector<8x1xf32>
    %cst_63 = arith.constant 5.120000e+02 : f32
    %122 = vector.broadcast %cst_63 : f32 to vector<8x1xf32>
    %123 = arith.divf %121, %122 : vector<8x1xf32>
    %124 = arith.mulf %118, %118 : vector<8x1xf32>
    %125 = arith.subf %123, %124 : vector<8x1xf32>
    %cst_64 = arith.constant 0.000000e+00 : f32
    %126 = vector.broadcast %cst_64 : f32 to vector<8x1xf32>
    %127 = arith.maximumf %125, %126 : vector<8x1xf32>
    %128 = vector.broadcast %118 : vector<8x1xf32> to vector<8x512xf32>
    %129 = arith.subf %114, %128 : vector<8x512xf32>
    %cst_65 = arith.constant 9.99999974E-6 : f32
    %130 = vector.broadcast %cst_65 : f32 to vector<8x1xf32>
    %131 = arith.addf %127, %130 : vector<8x1xf32>
    %132 = math.rsqrt %131 : vector<8x1xf32>
    %c0_66 = arith.constant 0 : index
    %c0_67 = arith.constant 0 : index
    %133 = vector.load %arg5[%c0_66, %c0_67] : memref<8x1xf32, #tpu.memory_space<vmem>>, vector<8x1xf32>
    %134 = arith.mulf %132, %133 : vector<8x1xf32>
    %135 = vector.broadcast %134 : vector<8x1xf32> to vector<8x512xf32>
    %136 = arith.mulf %129, %135 : vector<8x512xf32>
    %c0_68 = arith.constant 0 : index
    %c0_69 = arith.constant 0 : index
    %137 = vector.load %arg6[%c0_68, %c0_69] : memref<8x1xf32, #tpu.memory_space<vmem>>, vector<8x1xf32>
    %138 = vector.broadcast %137 : vector<8x1xf32> to vector<8x512xf32>
    %139 = arith.addf %136, %138 : vector<8x512xf32>
    %140 = arith.mulf %139, %139 : vector<8x512xf32>
    %cst_70 = arith.constant dense<0.000000e+00> : vector<512xf32>
    %141 = vector.multi_reduction <add>, %140, %cst_70 [0] : vector<8x512xf32> to vector<512xf32>
    %142 = vector.shape_cast %141 : vector<512xf32> to vector<1x512xf32>
    %cst_71 = arith.constant 1.000000e-24 : f32
    %143 = vector.broadcast %cst_71 : f32 to vector<1x512xf32>
    %144 = arith.maximumf %142, %143 : vector<1x512xf32>
    %145 = math.rsqrt %144 : vector<1x512xf32>
    %146 = arith.mulf %144, %145 : vector<1x512xf32>
    %cst_72 = arith.constant 1.000000e+00 : f32
    %147 = vector.broadcast %cst_72 : f32 to vector<1x512xf32>
    %148 = arith.mulf %147, %146 : vector<1x512xf32>
    %149 = math.tanh %148 : vector<1x512xf32>
    %cst_73 = arith.constant 0.999899983 : f32
    %150 = vector.broadcast %cst_73 : f32 to vector<1x512xf32>
    %151 = arith.minimumf %149, %150 : vector<1x512xf32>
    %cst_74 = arith.constant 1.000000e+00 : f32
    %152 = vector.broadcast %cst_74 : f32 to vector<1x512xf32>
    %153 = arith.mulf %145, %152 : vector<1x512xf32>
    %154 = arith.mulf %151, %153 : vector<1x512xf32>
    %155 = vector.broadcast %154 : vector<1x512xf32> to vector<8x512xf32>
    %156 = arith.mulf %155, %139 : vector<8x512xf32>
    %cst_75 = arith.constant 0.000000e+00 : f32
    %157 = vector.broadcast %cst_75 : f32 to vector<8x512xf32>
    %158 = arith.maximumf %156, %157 : vector<8x512xf32>
    %159 = arith.mulf %158, %158 : vector<8x512xf32>
    %cst_76 = arith.constant dense<0.000000e+00> : vector<512xf32>
    %160 = vector.multi_reduction <add>, %159, %cst_76 [0] : vector<8x512xf32> to vector<512xf32>
    %161 = vector.shape_cast %160 : vector<512xf32> to vector<1x512xf32>
    %cst_77 = arith.constant 1.000000e-24 : f32
    %162 = vector.broadcast %cst_77 : f32 to vector<1x512xf32>
    %163 = arith.maximumf %161, %162 : vector<1x512xf32>
    %164 = math.rsqrt %163 : vector<1x512xf32>
    %165 = arith.mulf %163, %164 : vector<1x512xf32>
    %cst_78 = arith.constant 1.000000e+00 : f32
    %166 = vector.broadcast %cst_78 : f32 to vector<1x512xf32>
    %167 = arith.mulf %166, %165 : vector<1x512xf32>
    %cst_79 = arith.constant -0.99999988 : f32
    %cst_80 = arith.constant 0.99999988 : f32
    %168 = vector.broadcast %cst_79 : f32 to vector<1x512xf32>
    %169 = arith.maximumf %168, %167 : vector<1x512xf32>
    %170 = vector.broadcast %cst_80 : f32 to vector<1x512xf32>
    %171 = arith.minimumf %170, %169 : vector<1x512xf32>
    %cst_81 = arith.constant 1.000000e+00 : f32
    %172 = vector.broadcast %cst_81 : f32 to vector<1x512xf32>
    %173 = arith.addf %172, %171 : vector<1x512xf32>
    %cst_82 = arith.constant 1.000000e+00 : f32
    %174 = vector.broadcast %cst_82 : f32 to vector<1x512xf32>
    %175 = arith.subf %174, %171 : vector<1x512xf32>
    %176 = arith.divf %173, %175 : vector<1x512xf32>
    %177 = math.log %176 : vector<1x512xf32>
    %cst_83 = arith.constant 5.000000e-01 : f32
    %178 = vector.broadcast %cst_83 : f32 to vector<1x512xf32>
    %179 = arith.mulf %178, %177 : vector<1x512xf32>
    %cst_84 = arith.constant 1.000000e+00 : f32
    %180 = vector.broadcast %cst_84 : f32 to vector<1x512xf32>
    %181 = arith.mulf %164, %180 : vector<1x512xf32>
    %182 = arith.mulf %179, %181 : vector<1x512xf32>
    %183 = vector.broadcast %182 : vector<1x512xf32> to vector<8x512xf32>
    %184 = arith.mulf %183, %158 : vector<8x512xf32>
    %cst_85 = arith.constant 0.000000e+00 : f32
    %185 = vector.broadcast %cst_85 : f32 to vector<8x512xf32>
    %c17_i32_86 = arith.constant 17 : i32
    %186 = tpu.dynamic_rotate %184 by %c17_i32_86 dim 1 : vector<8x512xf32>, i32 -> vector<8x512xf32>
    %c0_87 = arith.constant 0 : index
    %c0_88 = arith.constant 0 : index
    %187 = vector.load %arg2[%c0_87, %c0_88] : memref<9x512xf32, #tpu.memory_space<vmem>>, vector<1x512xf32>
    %188 = vector.broadcast %187 : vector<1x512xf32> to vector<8x512xf32>
    %189 = arith.mulf %186, %188 : vector<8x512xf32>
    %c0_89 = arith.constant 0 : index
    %c0_90 = arith.constant 0 : index
    %c0_91 = arith.constant 0 : index
    %190 = vector.load %arg7[%c0_89, %c0_90, %c0_91] : memref<9x8x8xf32, #tpu.memory_space<vmem>>, vector<1x8x8xf32>
    %191 = vector.shape_cast %190 : vector<1x8x8xf32> to vector<8x8xf32>
    %cst_92 = arith.constant dense<0.000000e+00> : vector<8x512xf32>
    %192 = tpu.matmul %191, %189, %cst_92 {dimension_numbers = #tpu.dot_dimension_numbers<[1], [0], [0], [1], [0, 0, 1, 1], [], []>} : vector<8x8xf32>, vector<8x512xf32>, vector<8x512xf32> -> vector<8x512xf32>
    %193 = arith.addf %185, %192 : vector<8x512xf32>
    %c16_i32_93 = arith.constant 16 : i32
    %194 = tpu.dynamic_rotate %184 by %c16_i32_93 dim 1 : vector<8x512xf32>, i32 -> vector<8x512xf32>
    %c1_94 = arith.constant 1 : index
    %c0_95 = arith.constant 0 : index
    %195 = vector.load %arg2[%c1_94, %c0_95] : memref<9x512xf32, #tpu.memory_space<vmem>>, vector<1x512xf32>
    %196 = vector.broadcast %195 : vector<1x512xf32> to vector<8x512xf32>
    %197 = arith.mulf %194, %196 : vector<8x512xf32>
    %c1_96 = arith.constant 1 : index
    %c0_97 = arith.constant 0 : index
    %c0_98 = arith.constant 0 : index
    %198 = vector.load %arg7[%c1_96, %c0_97, %c0_98] : memref<9x8x8xf32, #tpu.memory_space<vmem>>, vector<1x8x8xf32>
    %199 = vector.shape_cast %198 : vector<1x8x8xf32> to vector<8x8xf32>
    %cst_99 = arith.constant dense<0.000000e+00> : vector<8x512xf32>
    %200 = tpu.matmul %199, %197, %cst_99 {dimension_numbers = #tpu.dot_dimension_numbers<[1], [0], [0], [1], [0, 0, 1, 1], [], []>} : vector<8x8xf32>, vector<8x512xf32>, vector<8x512xf32> -> vector<8x512xf32>
    %201 = arith.addf %193, %200 : vector<8x512xf32>
    %c15_i32_100 = arith.constant 15 : i32
    %202 = tpu.dynamic_rotate %184 by %c15_i32_100 dim 1 : vector<8x512xf32>, i32 -> vector<8x512xf32>
    %c2_101 = arith.constant 2 : index
    %c0_102 = arith.constant 0 : index
    %203 = vector.load %arg2[%c2_101, %c0_102] : memref<9x512xf32, #tpu.memory_space<vmem>>, vector<1x512xf32>
    %204 = vector.broadcast %203 : vector<1x512xf32> to vector<8x512xf32>
    %205 = arith.mulf %202, %204 : vector<8x512xf32>
    %c2_103 = arith.constant 2 : index
    %c0_104 = arith.constant 0 : index
    %c0_105 = arith.constant 0 : index
    %206 = vector.load %arg7[%c2_103, %c0_104, %c0_105] : memref<9x8x8xf32, #tpu.memory_space<vmem>>, vector<1x8x8xf32>
    %207 = vector.shape_cast %206 : vector<1x8x8xf32> to vector<8x8xf32>
    %cst_106 = arith.constant dense<0.000000e+00> : vector<8x512xf32>
    %208 = tpu.matmul %207, %205, %cst_106 {dimension_numbers = #tpu.dot_dimension_numbers<[1], [0], [0], [1], [0, 0, 1, 1], [], []>} : vector<8x8xf32>, vector<8x512xf32>, vector<8x512xf32> -> vector<8x512xf32>
    %209 = arith.addf %201, %208 : vector<8x512xf32>
    %c1_i32_107 = arith.constant 1 : i32
    %210 = tpu.dynamic_rotate %184 by %c1_i32_107 dim 1 : vector<8x512xf32>, i32 -> vector<8x512xf32>
    %c3_108 = arith.constant 3 : index
    %c0_109 = arith.constant 0 : index
    %211 = vector.load %arg2[%c3_108, %c0_109] : memref<9x512xf32, #tpu.memory_space<vmem>>, vector<1x512xf32>
    %212 = vector.broadcast %211 : vector<1x512xf32> to vector<8x512xf32>
    %213 = arith.mulf %210, %212 : vector<8x512xf32>
    %c3_110 = arith.constant 3 : index
    %c0_111 = arith.constant 0 : index
    %c0_112 = arith.constant 0 : index
    %214 = vector.load %arg7[%c3_110, %c0_111, %c0_112] : memref<9x8x8xf32, #tpu.memory_space<vmem>>, vector<1x8x8xf32>
    %215 = vector.shape_cast %214 : vector<1x8x8xf32> to vector<8x8xf32>
    %cst_113 = arith.constant dense<0.000000e+00> : vector<8x512xf32>
    %216 = tpu.matmul %215, %213, %cst_113 {dimension_numbers = #tpu.dot_dimension_numbers<[1], [0], [0], [1], [0, 0, 1, 1], [], []>} : vector<8x8xf32>, vector<8x512xf32>, vector<8x512xf32> -> vector<8x512xf32>
    %217 = arith.addf %209, %216 : vector<8x512xf32>
    %c4_114 = arith.constant 4 : index
    %c0_115 = arith.constant 0 : index
    %c0_116 = arith.constant 0 : index
    %218 = vector.load %arg7[%c4_114, %c0_115, %c0_116] : memref<9x8x8xf32, #tpu.memory_space<vmem>>, vector<1x8x8xf32>
    %219 = vector.shape_cast %218 : vector<1x8x8xf32> to vector<8x8xf32>
    %cst_117 = arith.constant dense<0.000000e+00> : vector<8x512xf32>
    %220 = tpu.matmul %219, %184, %cst_117 {dimension_numbers = #tpu.dot_dimension_numbers<[1], [0], [0], [1], [0, 0, 1, 1], [], []>} : vector<8x8xf32>, vector<8x512xf32>, vector<8x512xf32> -> vector<8x512xf32>
    %221 = arith.addf %217, %220 : vector<8x512xf32>
    %c511_i32_118 = arith.constant 511 : i32
    %222 = tpu.dynamic_rotate %184 by %c511_i32_118 dim 1 : vector<8x512xf32>, i32 -> vector<8x512xf32>
    %c5_119 = arith.constant 5 : index
    %c0_120 = arith.constant 0 : index
    %223 = vector.load %arg2[%c5_119, %c0_120] : memref<9x512xf32, #tpu.memory_space<vmem>>, vector<1x512xf32>
    %224 = vector.broadcast %223 : vector<1x512xf32> to vector<8x512xf32>
    %225 = arith.mulf %222, %224 : vector<8x512xf32>
    %c5_121 = arith.constant 5 : index
    %c0_122 = arith.constant 0 : index
    %c0_123 = arith.constant 0 : index
    %226 = vector.load %arg7[%c5_121, %c0_122, %c0_123] : memref<9x8x8xf32, #tpu.memory_space<vmem>>, vector<1x8x8xf32>
    %227 = vector.shape_cast %226 : vector<1x8x8xf32> to vector<8x8xf32>
    %cst_124 = arith.constant dense<0.000000e+00> : vector<8x512xf32>
    %228 = tpu.matmul %227, %225, %cst_124 {dimension_numbers = #tpu.dot_dimension_numbers<[1], [0], [0], [1], [0, 0, 1, 1], [], []>} : vector<8x8xf32>, vector<8x512xf32>, vector<8x512xf32> -> vector<8x512xf32>
    %229 = arith.addf %221, %228 : vector<8x512xf32>
    %c497_i32_125 = arith.constant 497 : i32
    %230 = tpu.dynamic_rotate %184 by %c497_i32_125 dim 1 : vector<8x512xf32>, i32 -> vector<8x512xf32>
    %c6_126 = arith.constant 6 : index
    %c0_127 = arith.constant 0 : index
    %231 = vector.load %arg2[%c6_126, %c0_127] : memref<9x512xf32, #tpu.memory_space<vmem>>, vector<1x512xf32>
    %232 = vector.broadcast %231 : vector<1x512xf32> to vector<8x512xf32>
    %233 = arith.mulf %230, %232 : vector<8x512xf32>
    %c6_128 = arith.constant 6 : index
    %c0_129 = arith.constant 0 : index
    %c0_130 = arith.constant 0 : index
    %234 = vector.load %arg7[%c6_128, %c0_129, %c0_130] : memref<9x8x8xf32, #tpu.memory_space<vmem>>, vector<1x8x8xf32>
    %235 = vector.shape_cast %234 : vector<1x8x8xf32> to vector<8x8xf32>
    %cst_131 = arith.constant dense<0.000000e+00> : vector<8x512xf32>
    %236 = tpu.matmul %235, %233, %cst_131 {dimension_numbers = #tpu.dot_dimension_numbers<[1], [0], [0], [1], [0, 0, 1, 1], [], []>} : vector<8x8xf32>, vector<8x512xf32>, vector<8x512xf32> -> vector<8x512xf32>
    %237 = arith.addf %229, %236 : vector<8x512xf32>
    %c496_i32_132 = arith.constant 496 : i32
    %238 = tpu.dynamic_rotate %184 by %c496_i32_132 dim 1 : vector<8x512xf32>, i32 -> vector<8x512xf32>
    %c7_133 = arith.constant 7 : index
    %c0_134 = arith.constant 0 : index
    %239 = vector.load %arg2[%c7_133, %c0_134] : memref<9x512xf32, #tpu.memory_space<vmem>>, vector<1x512xf32>
    %240 = vector.broadcast %239 : vector<1x512xf32> to vector<8x512xf32>
    %241 = arith.mulf %238, %240 : vector<8x512xf32>
    %c7_135 = arith.constant 7 : index
    %c0_136 = arith.constant 0 : index
    %c0_137 = arith.constant 0 : index
    %242 = vector.load %arg7[%c7_135, %c0_136, %c0_137] : memref<9x8x8xf32, #tpu.memory_space<vmem>>, vector<1x8x8xf32>
    %243 = vector.shape_cast %242 : vector<1x8x8xf32> to vector<8x8xf32>
    %cst_138 = arith.constant dense<0.000000e+00> : vector<8x512xf32>
    %244 = tpu.matmul %243, %241, %cst_138 {dimension_numbers = #tpu.dot_dimension_numbers<[1], [0], [0], [1], [0, 0, 1, 1], [], []>} : vector<8x8xf32>, vector<8x512xf32>, vector<8x512xf32> -> vector<8x512xf32>
    %245 = arith.addf %237, %244 : vector<8x512xf32>
    %c495_i32_139 = arith.constant 495 : i32
    %246 = tpu.dynamic_rotate %184 by %c495_i32_139 dim 1 : vector<8x512xf32>, i32 -> vector<8x512xf32>
    %c8_140 = arith.constant 8 : index
    %c0_141 = arith.constant 0 : index
    %247 = vector.load %arg2[%c8_140, %c0_141] : memref<9x512xf32, #tpu.memory_space<vmem>>, vector<1x512xf32>
    %248 = vector.broadcast %247 : vector<1x512xf32> to vector<8x512xf32>
    %249 = arith.mulf %246, %248 : vector<8x512xf32>
    %c8_142 = arith.constant 8 : index
    %c0_143 = arith.constant 0 : index
    %c0_144 = arith.constant 0 : index
    %250 = vector.load %arg7[%c8_142, %c0_143, %c0_144] : memref<9x8x8xf32, #tpu.memory_space<vmem>>, vector<1x8x8xf32>
    %251 = vector.shape_cast %250 : vector<1x8x8xf32> to vector<8x8xf32>
    %cst_145 = arith.constant dense<0.000000e+00> : vector<8x512xf32>
    %252 = tpu.matmul %251, %249, %cst_145 {dimension_numbers = #tpu.dot_dimension_numbers<[1], [0], [0], [1], [0, 0, 1, 1], [], []>} : vector<8x8xf32>, vector<8x512xf32>, vector<8x512xf32> -> vector<8x512xf32>
    %253 = arith.addf %245, %252 : vector<8x512xf32>
    %c0_146 = arith.constant 0 : index
    %c0_147 = arith.constant 0 : index
    %254 = vector.load %arg8[%c0_146, %c0_147] : memref<8x1xf32, #tpu.memory_space<vmem>>, vector<8x1xf32>
    %255 = vector.broadcast %254 : vector<8x1xf32> to vector<8x512xf32>
    %256 = arith.addf %253, %255 : vector<8x512xf32>
    %257 = arith.mulf %256, %256 : vector<8x512xf32>
    %cst_148 = arith.constant dense<0.000000e+00> : vector<512xf32>
    %258 = vector.multi_reduction <add>, %257, %cst_148 [0] : vector<8x512xf32> to vector<512xf32>
    %259 = vector.shape_cast %258 : vector<512xf32> to vector<1x512xf32>
    %cst_149 = arith.constant 1.000000e-24 : f32
    %260 = vector.broadcast %cst_149 : f32 to vector<1x512xf32>
    %261 = arith.maximumf %259, %260 : vector<1x512xf32>
    %262 = math.rsqrt %261 : vector<1x512xf32>
    %263 = arith.mulf %261, %262 : vector<1x512xf32>
    %cst_150 = arith.constant 4.95171881 : f32
    %264 = vector.broadcast %cst_150 : f32 to vector<1x512xf32>
    %265 = arith.cmpf ogt, %263, %264 : vector<1x512xf32>
    %cst_151 = arith.constant 4.95171881 : f32
    %266 = vector.broadcast %cst_151 : f32 to vector<1x512xf32>
    %267 = arith.mulf %266, %262 : vector<1x512xf32>
    %268 = vector.broadcast %267 : vector<1x512xf32> to vector<8x512xf32>
    %269 = arith.mulf %256, %268 : vector<8x512xf32>
    %270 = vector.shape_cast %265 : vector<1x512xi1> to vector<1x512xi1>
    %271 = vector.broadcast %270 : vector<1x512xi1> to vector<8x512xi1>
    %272 = arith.select %271, %269, %256 : vector<8x512xi1>, vector<8x512xf32>
    %cst_152 = arith.constant dense<0.000000e+00> : vector<8xf32>
    %273 = vector.multi_reduction <add>, %272, %cst_152 [1] : vector<8x512xf32> to vector<8xf32>
    %274 = vector.shape_cast %273 : vector<8xf32> to vector<8x1xf32>
    %cst_153 = arith.constant 5.120000e+02 : f32
    %275 = vector.broadcast %cst_153 : f32 to vector<8x1xf32>
    %276 = arith.divf %274, %275 : vector<8x1xf32>
    %277 = arith.mulf %272, %272 : vector<8x512xf32>
    %cst_154 = arith.constant dense<0.000000e+00> : vector<8xf32>
    %278 = vector.multi_reduction <add>, %277, %cst_154 [1] : vector<8x512xf32> to vector<8xf32>
    %279 = vector.shape_cast %278 : vector<8xf32> to vector<8x1xf32>
    %cst_155 = arith.constant 5.120000e+02 : f32
    %280 = vector.broadcast %cst_155 : f32 to vector<8x1xf32>
    %281 = arith.divf %279, %280 : vector<8x1xf32>
    %282 = arith.mulf %276, %276 : vector<8x1xf32>
    %283 = arith.subf %281, %282 : vector<8x1xf32>
    %cst_156 = arith.constant 0.000000e+00 : f32
    %284 = vector.broadcast %cst_156 : f32 to vector<8x1xf32>
    %285 = arith.maximumf %283, %284 : vector<8x1xf32>
    %286 = vector.broadcast %276 : vector<8x1xf32> to vector<8x512xf32>
    %287 = arith.subf %272, %286 : vector<8x512xf32>
    %cst_157 = arith.constant 9.99999974E-6 : f32
    %288 = vector.broadcast %cst_157 : f32 to vector<8x1xf32>
    %289 = arith.addf %285, %288 : vector<8x1xf32>
    %290 = math.rsqrt %289 : vector<8x1xf32>
    %c0_158 = arith.constant 0 : index
    %c0_159 = arith.constant 0 : index
    %291 = vector.load %arg9[%c0_158, %c0_159] : memref<8x1xf32, #tpu.memory_space<vmem>>, vector<8x1xf32>
    %292 = arith.mulf %290, %291 : vector<8x1xf32>
    %293 = vector.broadcast %292 : vector<8x1xf32> to vector<8x512xf32>
    %294 = arith.mulf %287, %293 : vector<8x512xf32>
    %c0_160 = arith.constant 0 : index
    %c0_161 = arith.constant 0 : index
    %295 = vector.load %arg10[%c0_160, %c0_161] : memref<8x1xf32, #tpu.memory_space<vmem>>, vector<8x1xf32>
    %296 = vector.broadcast %295 : vector<8x1xf32> to vector<8x512xf32>
    %297 = arith.addf %294, %296 : vector<8x512xf32>
    %298 = arith.mulf %297, %297 : vector<8x512xf32>
    %cst_162 = arith.constant dense<0.000000e+00> : vector<512xf32>
    %299 = vector.multi_reduction <add>, %298, %cst_162 [0] : vector<8x512xf32> to vector<512xf32>
    %300 = vector.shape_cast %299 : vector<512xf32> to vector<1x512xf32>
    %cst_163 = arith.constant 1.000000e-24 : f32
    %301 = vector.broadcast %cst_163 : f32 to vector<1x512xf32>
    %302 = arith.maximumf %300, %301 : vector<1x512xf32>
    %303 = math.rsqrt %302 : vector<1x512xf32>
    %304 = arith.mulf %302, %303 : vector<1x512xf32>
    %cst_164 = arith.constant 1.000000e+00 : f32
    %305 = vector.broadcast %cst_164 : f32 to vector<1x512xf32>
    %306 = arith.mulf %305, %304 : vector<1x512xf32>
    %307 = math.tanh %306 : vector<1x512xf32>
    %cst_165 = arith.constant 0.999899983 : f32
    %308 = vector.broadcast %cst_165 : f32 to vector<1x512xf32>
    %309 = arith.minimumf %307, %308 : vector<1x512xf32>
    %cst_166 = arith.constant 1.000000e+00 : f32
    %310 = vector.broadcast %cst_166 : f32 to vector<1x512xf32>
    %311 = arith.mulf %303, %310 : vector<1x512xf32>
    %312 = arith.mulf %309, %311 : vector<1x512xf32>
    %313 = vector.broadcast %312 : vector<1x512xf32> to vector<8x512xf32>
    %314 = arith.mulf %313, %297 : vector<8x512xf32>
    %315 = arith.mulf %314, %314 : vector<8x512xf32>
    %cst_167 = arith.constant dense<0.000000e+00> : vector<512xf32>
    %316 = vector.multi_reduction <add>, %315, %cst_167 [0] : vector<8x512xf32> to vector<512xf32>
    %317 = vector.shape_cast %316 : vector<512xf32> to vector<1x512xf32>
    %318 = arith.mulf %0, %0 : vector<8x512xf32>
    %cst_168 = arith.constant dense<0.000000e+00> : vector<512xf32>
    %319 = vector.multi_reduction <add>, %318, %cst_168 [0] : vector<8x512xf32> to vector<512xf32>
    %320 = vector.shape_cast %319 : vector<512xf32> to vector<1x512xf32>
    %321 = arith.mulf %314, %0 : vector<8x512xf32>
    %cst_169 = arith.constant dense<0.000000e+00> : vector<512xf32>
    %322 = vector.multi_reduction <add>, %321, %cst_169 [0] : vector<8x512xf32> to vector<512xf32>
    %323 = vector.shape_cast %322 : vector<512xf32> to vector<1x512xf32>
    %cst_170 = arith.constant 2.000000e+00 : f32
    %324 = vector.broadcast %cst_170 : f32 to vector<1x512xf32>
    %325 = arith.mulf %324, %323 : vector<1x512xf32>
    %cst_171 = arith.constant 1.000000e+00 : f32
    %326 = vector.broadcast %cst_171 : f32 to vector<1x512xf32>
    %327 = arith.addf %326, %325 : vector<1x512xf32>
    %cst_172 = arith.constant 1.000000e+00 : f32
    %328 = vector.broadcast %cst_172 : f32 to vector<1x512xf32>
    %329 = arith.mulf %328, %320 : vector<1x512xf32>
    %330 = arith.addf %327, %329 : vector<1x512xf32>
    %331 = vector.broadcast %330 : vector<1x512xf32> to vector<8x512xf32>
    %332 = arith.mulf %331, %314 : vector<8x512xf32>
    %cst_173 = arith.constant 1.000000e+00 : f32
    %333 = vector.broadcast %cst_173 : f32 to vector<1x512xf32>
    %334 = arith.mulf %333, %317 : vector<1x512xf32>
    %cst_174 = arith.constant 1.000000e+00 : f32
    %335 = vector.broadcast %cst_174 : f32 to vector<1x512xf32>
    %336 = arith.subf %335, %334 : vector<1x512xf32>
    %337 = vector.broadcast %336 : vector<1x512xf32> to vector<8x512xf32>
    %338 = arith.mulf %337, %0 : vector<8x512xf32>
    %339 = arith.addf %332, %338 : vector<8x512xf32>
    %cst_175 = arith.constant 2.000000e+00 : f32
    %340 = vector.broadcast %cst_175 : f32 to vector<1x512xf32>
    %341 = arith.mulf %340, %323 : vector<1x512xf32>
    %cst_176 = arith.constant 1.000000e+00 : f32
    %342 = vector.broadcast %cst_176 : f32 to vector<1x512xf32>
    %343 = arith.addf %342, %341 : vector<1x512xf32>
    %cst_177 = arith.constant 1.000000e+00 : f32
    %344 = vector.broadcast %cst_177 : f32 to vector<1x512xf32>
    %345 = arith.mulf %344, %317 : vector<1x512xf32>
    %346 = arith.mulf %345, %320 : vector<1x512xf32>
    %347 = arith.addf %343, %346 : vector<1x512xf32>
    %cst_178 = arith.constant 9.99999996E-13 : f32
    %348 = vector.broadcast %cst_178 : f32 to vector<1x512xf32>
    %349 = arith.maximumf %347, %348 : vector<1x512xf32>
    %350 = tpu.reciprocal %349 {approx = true} : vector<1x512xf32> -> vector<1x512xf32>
    %351 = vector.broadcast %350 : vector<1x512xf32> to vector<8x512xf32>
    %352 = arith.mulf %339, %351 : vector<8x512xf32>
    %353 = arith.mulf %352, %352 : vector<8x512xf32>
    %cst_179 = arith.constant dense<0.000000e+00> : vector<512xf32>
    %354 = vector.multi_reduction <add>, %353, %cst_179 [0] : vector<8x512xf32> to vector<512xf32>
    %355 = vector.shape_cast %354 : vector<512xf32> to vector<1x512xf32>
    %cst_180 = arith.constant 1.000000e-24 : f32
    %356 = vector.broadcast %cst_180 : f32 to vector<1x512xf32>
    %357 = arith.maximumf %355, %356 : vector<1x512xf32>
    %358 = math.rsqrt %357 : vector<1x512xf32>
    %359 = arith.mulf %357, %358 : vector<1x512xf32>
    %cst_181 = arith.constant 0.999899983 : f32
    %360 = vector.broadcast %cst_181 : f32 to vector<1x512xf32>
    %361 = arith.cmpf ogt, %359, %360 : vector<1x512xf32>
    %cst_182 = arith.constant 0.999899983 : f32
    %362 = vector.broadcast %cst_182 : f32 to vector<1x512xf32>
    %363 = arith.mulf %362, %358 : vector<1x512xf32>
    %364 = vector.broadcast %363 : vector<1x512xf32> to vector<8x512xf32>
    %365 = arith.mulf %352, %364 : vector<8x512xf32>
    %366 = vector.shape_cast %361 : vector<1x512xi1> to vector<1x512xi1>
    %367 = vector.broadcast %366 : vector<1x512xi1> to vector<8x512xi1>
    %368 = arith.select %367, %365, %352 : vector<8x512xi1>, vector<8x512xf32>
    %cst_183 = arith.constant 0.000000e+00 : f32
    %369 = vector.broadcast %cst_183 : f32 to vector<8x512xf32>
    %370 = arith.maximumf %368, %369 : vector<8x512xf32>
    %c0_184 = arith.constant 0 : index
    %c0_185 = arith.constant 0 : index
    %371 = vector.load %arg11[%c0_184, %c0_185] : memref<8x512xf32, #tpu.memory_space<vmem>>, vector<8x512xf32>
    tpu.vector_store %arg11[%c0_184, %c0_185], %370 {strides = array<i32>} : memref<8x512xf32, #tpu.memory_space<vmem>>, vector<8x512xf32>,
    return
  }
  func.func @transform_0(%arg0: i32) -> (i32, i32) {
    %c0_i32 = arith.constant 0 : i32
    %c0_i32_0 = arith.constant 0 : i32
    %c0_i32_1 = arith.constant 0 : i32
    return %c0_i32, %c0_i32_0 : i32, i32
  }
  func.func @transform_1(%arg0: i32) -> (i32, i32) {
    %c0_i32 = arith.constant 0 : i32
    %c0_i32_0 = arith.constant 0 : i32
    %c0_i32_1 = arith.constant 0 : i32
    return %c0_i32, %c0_i32_0 : i32, i32
  }
  func.func @transform_2(%arg0: i32) -> (i32, i32, i32) {
    %c0_i32 = arith.constant 0 : i32
    %c0_i32_0 = arith.constant 0 : i32
    %c0_i32_1 = arith.constant 0 : i32
    %c0_i32_2 = arith.constant 0 : i32
    return %c0_i32, %c0_i32_0, %c0_i32_1 : i32, i32, i32
  }
  func.func @transform_3(%arg0: i32) -> (i32, i32) {
    %c0_i32 = arith.constant 0 : i32
    %c0_i32_0 = arith.constant 0 : i32
    %c0_i32_1 = arith.constant 0 : i32
    return %c0_i32, %c0_i32_0 : i32, i32
  }
  func.func @transform_4(%arg0: i32) -> (i32, i32) {
    %c0_i32 = arith.constant 0 : i32
    %c0_i32_0 = arith.constant 0 : i32
    %c0_i32_1 = arith.constant 0 : i32
    return %c0_i32, %c0_i32_0 : i32, i32
  }
  func.func @transform_5(%arg0: i32) -> (i32, i32) {
    %c0_i32 = arith.constant 0 : i32
    %c0_i32_0 = arith.constant 0 : i32
    %c0_i32_1 = arith.constant 0 : i32
    return %c0_i32, %c0_i32_0 : i32, i32
  }
  func.func @transform_6(%arg0: i32) -> (i32, i32, i32) {
    %c0_i32 = arith.constant 0 : i32
    %c0_i32_0 = arith.constant 0 : i32
    %c0_i32_1 = arith.constant 0 : i32
    %c0_i32_2 = arith.constant 0 : i32
    return %c0_i32, %c0_i32_0, %c0_i32_1 : i32, i32, i32
  }
  func.func @transform_7(%arg0: i32) -> (i32, i32) {
    %c0_i32 = arith.constant 0 : i32
    %c0_i32_0 = arith.constant 0 : i32
    %c0_i32_1 = arith.constant 0 : i32
    return %c0_i32, %c0_i32_0 : i32, i32
  }
  func.func @transform_8(%arg0: i32) -> (i32, i32) {
    %c0_i32 = arith.constant 0 : i32
    %c0_i32_0 = arith.constant 0 : i32
    %c0_i32_1 = arith.constant 0 : i32
    return %c0_i32, %c0_i32_0 : i32, i32
  }
  func.func @transform_9(%arg0: i32) -> (i32, i32) {
    %c0_i32 = arith.constant 0 : i32
    %c0_i32_0 = arith.constant 0 : i32
    %c0_i32_1 = arith.constant 0 : i32
    return %c0_i32, %c0_i32_0 : i32, i32
  }
  func.func @transform_10(%arg0: i32) -> (i32, i32) {
    %c0_i32 = arith.constant 0 : i32
    %c0_i32_0 = arith.constant 0 : i32
    %c0_i32_1 = arith.constant 0 : i32
    return %c0_i32, %c0_i32_0 : i32, i32
  }
}

</mosaic_0001>

<bundles_post_ra>
// kernel: poincare_residual_block.1
= control target key start
LH: loop header
LB: loop body
LE: loop exit
PB: predicated region body
PF: predicated region fallthrough
CT: control target
= control target key end

     0   :  { %s4158_s21 = smov 16   ;;  %s4159_s22 = smov 17   ;;  %vm207_vm2 = vcmask 64512   ;;  %s5060_s0 = inlined_call_operand.vmem [shape: f32[8,512], index: 0, kind: input, shape index: {}]   ;;  %s5061_s3 = inlined_call_operand.vmem [shape: f32[8,1], index: 3, kind: input, shape index: {}]   ;;  %s5062_s1 = inlined_call_operand.vmem [shape: f32[9,512], index: 1, kind: input, shape index: {}]   ;;  %s5063_s2 = inlined_call_operand.vmem [shape: f32[9,8,8], index: 2, kind: input, shape index: {}]   ;;  %s5064_s5 = inlined_call_operand.vmem [shape: f32[8,1], index: 5, kind: input, shape index: {}]   ;;  %s5065_s4 = inlined_call_operand.vmem [shape: f32[8,1], index: 4, kind: input, shape index: {}]   ;;  %s5066_s7 = inlined_call_operand.vmem [shape: f32[8,1], index: 7, kind: input, shape index: {}]   ;;  %s5067_s6 = inlined_call_operand.vmem [shape: f32[9,8,8], index: 6, kind: input, shape index: {}]   ;;  %s5068_s9 = inlined_call_operand.vmem [shape: f32[8,1], index: 9, kind: input, shape index: {}]   ;;  %s5069_s8 = inlined_call_operand.vmem [shape: f32[8,1], index: 8, kind: input, shape index: {}]   ;;  %s5070_s10 = inlined_call_operand.vmem [shape: f32[8,512], index: 10, kind: output, shape index: {}]  }
   0x1   :  { %v4225_v0 = vld [vmem:[%s5060_s0 + $0x18] sm:$0xff]  ;;  %v4230_v1 = vld [vmem:[%s5060_s0] sm:$0xff]  ;;  %v4235_v2 = vld [vmem:[%s5060_s0 + $0x10] sm:$0xff]  ;;  %s4160_s23 = smov 15   ;;  %s4161_s24 = smov 1  }
   0x2   :  { %v42_v3 = vmul.f32 %v4225_v0, %v4225_v0  ;;  %v39_v4 = vmul.f32 %v4230_v1, %v4230_v1  ;;  %v41_v5 = vmul.f32 %v4235_v2, %v4235_v2  ;;  %v4246_v6 = vld [vmem:[%s5060_s0 + $0x8] sm:$0xff]  ;;  %s4162_s25 = smov 127   ;;  %s4163_s26 = smov 113  }
   0x3   :  { %v40_v7 = vmul.f32 %v4246_v6, %v4246_v6  ;;  %s4164_s27 = smov 112   ;;  %s4165_s28 = smov 111  }
   0x4   :  { %v61_v8 = vrot.slane %v42_v3, 4  ;;  %v43_v9 = vrot.slane %v39_v4, 4  ;;  %v55_v10 = vrot.slane %v41_v5, 4 }
   0x5   :  { %v49_v11 = vrot.slane %v40_v7, 4 }
   0x6   :  { %v62_v12 = vadd.f32 %v61_v8, %v42_v3  ;;  %v44_v13 = vadd.f32 %v43_v9, %v39_v4  ;;  %v56_v14 = vadd.f32 %v55_v10, %v41_v5 }
   0x7   :  { %v50_v15 = vadd.f32 %v49_v11, %v40_v7 }
   0x8   :  { %v63_v16 = vrot.slane %v62_v12, 2  ;;  %v45_v17 = vrot.slane %v44_v13, 2  ;;  %v57_v18 = vrot.slane %v56_v14, 2 }
   0x9   :  { %v51_v19 = vrot.slane %v50_v15, 2 }
   0xa   :  { %v64_v20 = vadd.f32 %v63_v16, %v62_v12  ;;  %v46_v21 = vadd.f32 %v45_v17, %v44_v13  ;;  %v58_v22 = vadd.f32 %v57_v18, %v56_v14  ;;  %v5071_v16 = vmov 0.0  }
   0xb   :  { %v52_v23 = vadd.f32 %v51_v19, %v50_v15  ;;  %275 = vmatprep.mubr.f32.mxu0 %v5071_v16  ;;  %346 = vmatprep.mubr.f32.mxu1 %v5071_v16 }
   0xc   :  { %v65_v24 = vrot.slane %v64_v20, 1  ;;  %v47_v25 = vrot.slane %v46_v21, 1  ;;  %v59_v26 = vrot.slane %v58_v22, 1 }
   0xd   :  { %v53_v27 = vrot.slane %v52_v23, 1 }
   0xe   :  { %v4250_v28 = vadd.f32 %v65_v24, %v64_v20  ;;  %v4252_v29 = vadd.f32 %v47_v25, %v46_v21  ;;  %v4254_v30 = vadd.f32 %v59_v26, %v58_v22 }
   0xf   :  { %v4256_v31 = vadd.f32 %v53_v27, %v52_v23 }
  0x10   :  { %5082 = vst [vmem:[#allocation2_spill] sm:$0xff] %v4250_v28  ;;  %5083 = vst [vmem:[#allocation3_spill] sm:$0xff] %v4252_v29  ;;  %v70_v32 = vmax.f32 %v4250_v28, 1e-24  ;;  %v67_v33 = vmax.f32 %v4252_v29, 1e-24 }
  0x11   :  { %5084 = vst [vmem:[#allocation4_spill] sm:$0xff] %v4254_v30  ;;  %5085 = vst [vmem:[#allocation5_spill] sm:$0xff] %v4256_v31  ;;  %v69_v34 = vmax.f32 %v4254_v30, 1e-24  ;;  %v68_v35 = vmax.f32 %v4256_v31, 1e-24 }
  0x12   :  { %4037 = vrsqrt.f32 %v70_v32 }
  0x13   :  { %4039 = vrsqrt.f32 %v67_v33 }
  0x14   :  { %4041 = vrsqrt.f32 %v69_v34 }
  0x15   :  { %4043 = vrsqrt.f32 %v68_v35 }
  0x1c   :  { %v4038_v36 = vpop.eup %4037 }
  0x1d   :  { %v4040_v37 = vpop.eup %4039  ;;  %v78_v38 = vmul.f32 %v4038_v36, %v70_v32 }
  0x1e   :  { %v4042_v39 = vpop.eup %4041  ;;  %v75_v40 = vmul.f32 %v4040_v37, %v67_v33 }
  0x1f   :  { %v4044_v41 = vpop.eup %4043  ;;  %v3897_v42 = vclamps-f32 %v78_v38, 0.9999999  ;;  %v77_v43 = vmul.f32 %v4042_v39, %v69_v34 }
  0x20   :  { %v3894_v44 = vclamps-f32 %v75_v40, 0.9999999  ;;  %v76_v45 = vmul.f32 %v4044_v41, %v68_v35 }
  0x21   :  { %v94_v46 = vsub.f32 1.0, %v3897_v42  ;;  %v3896_v47 = vclamps-f32 %v77_v43, 0.9999999  ;;  %v90_v52 = vadd.f32 1.0, %v3897_v42 }
  0x22   :  { %v91_v48 = vsub.f32 1.0, %v3894_v44  ;;  %v3895_v49 = vclamps-f32 %v76_v45, 0.9999999  ;;  %v87_v53 = vadd.f32 1.0, %v3894_v44 }
  0x23   :  { %4045 = vrcp.f32 %v94_v46  ;;  %v93_v50 = vsub.f32 1.0, %v3896_v47  ;;  %v89_v54 = vadd.f32 1.0, %v3896_v47 }
  0x24   :  { %4047 = vrcp.f32 %v91_v48  ;;  %v92_v51 = vsub.f32 1.0, %v3895_v49  ;;  %v88_v56 = vadd.f32 1.0, %v3895_v49 }
  0x25   :  { %4049 = vrcp.f32 %v93_v50 }
  0x26   :  { %4051 = vrcp.f32 %v92_v51 }
  0x2d   :  { %v4046_v55 = vpop.eup %4045 }
  0x2e   :  { %v4048_v57 = vpop.eup %4047  ;;  %v102_v58 = vmul.f32 %v4046_v55, %v90_v52  ;;  %v3899_v52 = vld [vmem:[%s5063_s2 + $0x8] sm:$0xff] }
  0x2f   :  { %v4050_v59 = vpop.eup %4049  ;;  %v96_v60 = vmul.f32 %v4048_v57, %v87_v53 }
  0x30   :  { %v4052_v61 = vpop.eup %4051  ;;  %4053 = vlog2.f32 %v102_v58  ;;  %v100_v62 = vmul.f32 %v4050_v59, %v89_v54 }
  0x31   :  { %4055 = vlog2.f32 %v96_v60  ;;  %v98_v63 = vmul.f32 %v4052_v61, %v88_v56 }
  0x32   :  { %4057 = vlog2.f32 %v100_v62  ;;  %v3904_v62 = vld [vmem:[%s5062_s1 + $0x2] ss:$8 sm:$0xf] }
  0x33   :  { %4059 = vlog2.f32 %v98_v63 }
  0x3a   :  { %v4054_v3 = vpop.eup %4053 }
  0x3b   :  { %v4056_v4 = vpop.eup %4055  ;;  %v110_v5 = vmul.f32 0.6931472, %v4054_v3 }
  0x3c   :  { %v4058_v7 = vpop.eup %4057  ;;  %v104_v8 = vmul.f32 0.6931472, %v4056_v4 }
  0x3d   :  { %v4060_v9 = vpop.eup %4059  ;;  %v114_v10 = vmul.f32 0.5, %v110_v5  ;;  %v108_v11 = vmul.f32 0.6931472, %v4058_v7 }
  0x3e   :  { %v111_v12 = vmul.f32 0.5, %v104_v8  ;;  %v106_v13 = vmul.f32 0.6931472, %v4060_v9 }
  0x3f   :  { %v118_v14 = vmul.f32 %v4038_v36, %v114_v10  ;;  %v113_v15 = vmul.f32 0.5, %v108_v11  ;;  %v3898_v36 = vld [vmem:[%s5062_s1 + $0x1] ss:$8 sm:$0xf] }
  0x40   :  { %v115_v17 = vmul.f32 %v4040_v37, %v111_v12  ;;  %v112_v18 = vmul.f32 0.5, %v106_v13  ;;  %v164_v12 = vld [vmem:[%s5063_s2] sm:$0xff] }
  0x41   :  { %v4265_v19 = vmul.f32 %v118_v14, %v4225_v0  ;;  %v117_v20 = vmul.f32 %v4042_v39, %v113_v15  ;;  %v4166_v0 = vmov 0  }
  0x42   :  { %v4268_v21 = vmul.f32 %v115_v17, %v4230_v1  ;;  %v116_v22 = vmul.f32 %v4044_v41, %v112_v18  ;;  %4035 = vset.pattern.permute.xlu0 %v4166_v0  ;;  %v1795_v1 = vld [vmem:[%s5061_s3] sm:$0xff]  ;;  %4036 = vset.pattern.permute.xlu1 %v4166_v0 }
  0x43   :  { %171 = vrot.lane.b32.xlu1 %v4265_v19, %s4158_s21  ;;  %v4273_v23 = vmul.f32 %v117_v20, %v4235_v2  ;;  %v131_v2 = vlaneseq  ;;  %v138_v41 = vld [vmem:[%s5062_s1] ss:$8 sm:$0xf]  ;;  %v3908_v0 = vld [vmem:[%s5062_s1 + $0x3] ss:$8 sm:$0xf] }
  0x44   :  { %165 = vrot.lane.b32.xlu0 %v4268_v21, %s4158_s21  ;;  %v4278_v24 = vmul.f32 %v116_v22, %v4246_v6 }
  0x45   :  { %v141_v6 = vshrl.u32 %v131_v2, 7  ;;  %v4343_v25 = vand.u32 127, %v131_v2 }
  0x47   :  { %169 = vrot.lane.b32.xlu1 %v4273_v23, %s4158_s21  ;;  %v4345_v26 = vsub.s32 3, %v141_v6  ;;  %v4347_v27 = vsub.s32 1, %v141_v6  ;;  %v4349_v32 = vsub.s32 2, %v141_v6  ;;  %v4351_v34 = vsub.s32 0, %v141_v6 }
  0x48   :  { %167 = vrot.lane.b32.xlu0 %v4278_v24, %s4158_s21  ;;  %vm173_vm0 = vcmp.lt.s32.totalorder %v4343_v25, 16  ;;  %vm133_vm1 = vcmp.lt.s32.totalorder %v4343_v25, 17  ;;  %vm506_vm3 = vcmp.lt.s32.totalorder %v4343_v25, 15  ;;  %vm697_vm4 = vcmp.lt.s32.totalorder %v4343_v25, 1 }
  0x49   :  { %v4358_v37 = vrot.slane %v3898_v36, %v4345_v26  ;;  %v4361_v38 = vrot.slane %v3898_v36, %v4347_v27  ;;  %v4364_v39 = vrot.slane %v3898_v36, %v4349_v32  ;;  %v4370_v42 = vrot.slane %v3898_v36, %v4351_v34 }
  0x4a   :  { %v4384_v50 = vrot.slane %v138_v41, %v4347_v27  ;;  %v4395_v57 = vrot.slane %v138_v41, %v4349_v32  ;;  %v4400_v59 = vrot.slane %v138_v41, %v4351_v34  ;;  %v4403_v60 = vrot.slane %v138_v41, %v4345_v26 }
  0x4b   :  { %125 = vrot.lane.b32.xlu1 %v4278_v24, %s4159_s22  ;;  %v4421_v10 = vrot.slane %v3904_v62, %v4347_v27  ;;  %v4429_v15 = vrot.slane %v3904_v62, %v4349_v32  ;;  %v4435_v18 = vrot.slane %v3904_v62, %v4351_v34  ;;  %v4438_v20 = vrot.slane %v3904_v62, %v4345_v26 }
  0x4c   :  { %123 = vrot.lane.b32.xlu0 %v4268_v21, %s4159_s22  ;;  %v4456_v41 = vrot.slane %v3908_v0, %v4347_v27  ;;  %vm1039_vm5 = vcmp.lt.s32.totalorder %v4343_v25, 127  ;;  %vm1230_vm6 = vcmp.lt.s32.totalorder %v4343_v25, 113  ;;  %vm1421_vm7 = vcmp.lt.s32.totalorder %v4343_v25, 112 }
  0x4d   :  { %vm1612_vm8 = vcmp.lt.s32.totalorder %v4343_v25, 111 }
  0x4f   :  { %127 = vrot.lane.b32.xlu1 %v4273_v23, %s4159_s22 }
  0x50   :  { %129 = vrot.lane.b32.xlu0 %v4265_v19, %s4159_s22 }
  0x53   :  { %500 = vrot.lane.b32.xlu1 %v4278_v24, %s4160_s23 }
  0x54   :  { %498 = vrot.lane.b32.xlu0 %v4268_v21, %s4160_s23 }
  0x57   :  { %502 = vrot.lane.b32.xlu1 %v4273_v23, %s4160_s23 }
  0x58   :  { %504 = vrot.lane.b32.xlu0 %v4265_v19, %s4160_s23 }
  0x5b   :  { %691 = vrot.lane.b32.xlu1 %v4278_v24, %s4161_s24 }
  0x5c   :  { %689 = vrot.lane.b32.xlu0 %v4268_v21, %s4161_s24 }
  0x5f   :  { %693 = vrot.lane.b32.xlu1 %v4273_v23, %s4161_s24 }
  0x60   :  { %695 = vrot.lane.b32.xlu0 %v4265_v19, %s4161_s24 }
  0x63   :  { %1035 = vrot.lane.b32.xlu1 %v4273_v23, %s4162_s25 }
  0x64   :  { %1033 = vrot.lane.b32.xlu0 %v4278_v24, %s4162_s25 }
  0x67   :  { %1037 = vrot.lane.b32.xlu1 %v4265_v19, %s4162_s25 }
  0x68   :  { %1031 = vrot.lane.b32.xlu0 %v4268_v21, %s4162_s25 }
  0x6b   :  { %1226 = vrot.lane.b32.xlu1 %v4273_v23, %s4163_s26 }
  0x6c   :  { %1224 = vrot.lane.b32.xlu0 %v4278_v24, %s4163_s26 }
  0x6f   :  { %1228 = vrot.lane.b32.xlu1 %v4265_v19, %s4163_s26 }
  0x70   :  { %1222 = vrot.lane.b32.xlu0 %v4268_v21, %s4163_s26 }
  0x73   :  { %1417 = vrot.lane.b32.xlu1 %v4273_v23, %s4164_s27 }
  0x74   :  { %1415 = vrot.lane.b32.xlu0 %v4278_v24, %s4164_s27 }
  0x77   :  { %1419 = vrot.lane.b32.xlu1 %v4265_v19, %s4164_s27 }
  0x78   :  { %1413 = vrot.lane.b32.xlu0 %v4268_v21, %s4164_s27 }
  0x7b   :  { %1608 = vrot.lane.b32.xlu1 %v4273_v23, %s4165_s28 }
  0x7c   :  { %1606 = vrot.lane.b32.xlu0 %v4278_v24, %s4165_s28 }
  0x7f   :  { %1610 = vrot.lane.b32.xlu1 %v4265_v19, %s4165_s28 }
  0x80   :  { %1604 = vrot.lane.b32.xlu0 %v4268_v21, %s4165_s28 }
  0x84   :  { %1798 = vperm.xlu0 %4035, %v1795_v1  }
  0xb5   :  { %v172_v33 = vpop.permute.xlu1 %171 }
  0xb6   :  { %v166_v35 = vpop.permute.xlu0 %165 }
  0xb7   :  { %v177_v43 = vsel %vm173_vm0, %v172_v33, %v166_v35 }
  0xb8   :  { %v201_v54 = vmul.f32 %v4370_v42, %v177_v43 }
  0xb9   :  { %v170_v40 = vpop.permute.xlu1 %169 }
  0xba   :  { %v168_v44 = vpop.permute.xlu0 %167  ;;  %v174_v45 = vsel %vm173_vm0, %v170_v40, %v172_v33 }
  0xbb   :  { %v175_v46 = vsel %vm173_vm0, %v168_v44, %v170_v40  ;;  %v204_v47 = vmul.f32 %v4358_v37, %v174_v45  ;;  %v176_v48 = vsel %vm173_vm0, %v166_v35, %v168_v44  ;;  %v3905_v44 = vld [vmem:[%s5063_s2 + $0x10] sm:$0xff] }
  0xbc   :  { %v202_v49 = vmul.f32 %v4361_v38, %v176_v48  ;;  %v203_v51 = vmul.f32 %v4364_v39, %v175_v46 }
  0xbd   :  { %282 = vmatprep.subr.mxu1 %v204_v47  ;;  %v126_v53 = vpop.permute.xlu1 %125  ;;  %v4464_v47 = vrot.slane %v3908_v0, %v4349_v32 }
  0xbe   :  { %211 = vmatprep.subr.mxu0 %v202_v49  ;;  %v124_v55 = vpop.permute.xlu0 %123  ;;  %283 = vmatpush1.msra.mxu1 %v203_v51  ;;  %v4470_v49 = vrot.slane %v3908_v0, %v4351_v34  ;;  %v4473_v51 = vrot.slane %v3908_v0, %v4345_v26 }
  0xbf   :  { %v136_v56 = vsel %vm133_vm1, %v124_v55, %v126_v53  ;;  %212 = vmatpush1.msra.mxu0 %v201_v54  ;;  %3901 = vmatmul.mubr.msk.f32.vlgmr.msra.gmra.mrb[0].mxu1 %vm207_vm2, %v3899_v52 }
  0xc0   :  { %v161_v58 = vmul.f32 %v4384_v50, %v136_v56  ;;  %3900 = vmatmul.mubr.msk.f32.vlgmr.msra.gmra.mrb[0].mxu0 %vm207_vm2, %v3899_v52  ;;  %491 = vmatprep.mubr.f32.mxu1 %v5071_v16 }
  0xc1   :  { %v128_v61 = vpop.permute.xlu1 %127  ;;  %420 = vmatprep.mubr.f32.mxu0 %v5071_v16 }
  0xc2   :  { %v135_v63 = vsel %vm133_vm1, %v126_v53, %v128_v61  ;;  %v130_v3 = vpop.permute.xlu0 %129  ;;  %356 = vmatprep.subr.mxu0 %v161_v58  ;;  %v3915_v53 = vld [vmem:[%s5062_s1 + $0x5] ss:$8 sm:$0xf] }
  0xc3   :  { %v162_v4 = vmul.f32 %v4395_v57, %v135_v63  ;;  %v134_v5 = vsel %vm133_vm1, %v128_v61, %v130_v3  ;;  %v137_v7 = vsel %vm133_vm1, %v130_v3, %v124_v55  ;;  %v4491_v3 = vrot.slane %v3915_v53, %v4347_v27 }
  0xc4   :  { %v160_v8 = vmul.f32 %v4400_v59, %v137_v7  ;;  %v163_v9 = vmul.f32 %v4403_v60, %v134_v5 }
  0xc5   :  { %v501_v11 = vpop.permute.xlu1 %500 }
  0xc6   :  { %357 = vmatpush1.msra.mxu0 %v160_v8  ;;  %427 = vmatprep.subr.mxu1 %v163_v9  ;;  %v499_v13 = vpop.permute.xlu0 %498 }
  0xc7   :  { %v509_v14 = vsel %vm506_vm3, %v499_v13, %v501_v11  ;;  %428 = vmatpush1.msra.mxu1 %v162_v4  ;;  %v3909_v4 = vld [vmem:[%s5063_s2 + $0x18] sm:$0xff] }
  0xc8   :  { %v535_v17 = vmul.f32 %v4421_v10, %v509_v14  ;;  %3902 = vmatmul.mubr.msk.f32.vlgmr.msra.gmra.mrb[0].mxu0 %vm207_vm2, %v164_v12  ;;  %3903 = vmatmul.mubr.msk.f32.vlgmr.msra.gmra.mrb[0].mxu1 %vm207_vm2, %v164_v12  ;;  %v4508_v12 = vrot.slane %v3915_v53, %v4351_v34  ;;  %v3919_v14 = vld [vmem:[%s5062_s1 + $0x6] ss:$8 sm:$0xf] }
  0xc9   :  { %v503_v22 = vpop.permute.xlu1 %502  ;;  %607 = vmatprep.mubr.f32.mxu0 %v5071_v16  ;;  %678 = vmatprep.mubr.f32.mxu1 %v5071_v16 }
  0xca   :  { %v508_v1 = vsel %vm506_vm3, %v501_v11, %v503_v22  ;;  %v505_v2 = vpop.permute.xlu0 %504  ;;  %543 = vmatprep.subr.mxu0 %v535_v17  ;;  %v4503_v11 = vrot.slane %v3915_v53, %v4345_v26 }
  0xcb   :  { %v536_v6 = vmul.f32 %v4429_v15, %v508_v1  ;;  %v507_v33 = vsel %vm506_vm3, %v503_v22, %v505_v2  ;;  %v510_v35 = vsel %vm506_vm3, %v505_v2, %v499_v13  ;;  %v4511_v13 = vrot.slane %v3915_v53, %v4349_v32 }
  0xcc   :  { %v534_v36 = vmul.f32 %v4435_v18, %v510_v35  ;;  %v537_v40 = vmul.f32 %v4438_v20, %v507_v33  ;;  %v4528_v1 = vrot.slane %v3919_v14, %v4347_v27 }
  0xcd   :  { %v692_v43 = vpop.permute.xlu1 %691 }
  0xce   :  { %544 = vmatpush1.msra.mxu0 %v534_v36  ;;  %614 = vmatprep.subr.mxu1 %v537_v40  ;;  %v690_v45 = vpop.permute.xlu0 %689 }
  0xcf   :  { %v700_v46 = vsel %vm697_vm4, %v690_v45, %v692_v43  ;;  %615 = vmatpush1.msra.mxu1 %v536_v6  ;;  %v3912_v6 = vld [vmem:[%s5063_s2 + $0x20] sm:$0xff] }
  0xd0   :  { %v726_v48 = vmul.f32 %v4456_v41, %v700_v46  ;;  %3906 = vmatmul.mubr.msk.f32.vlgmr.msra.gmra.mrb[0].mxu0 %vm207_vm2, %v3905_v44  ;;  %3907 = vmatmul.mubr.msk.f32.vlgmr.msra.gmra.mrb[0].mxu1 %vm207_vm2, %v3905_v44  ;;  %v4544_v44 = vrot.slane %v3919_v14, %v4351_v34 }
  0xd1   :  { %v694_v52 = vpop.permute.xlu1 %693  ;;  %798 = vmatprep.mubr.f32.mxu0 %v5071_v16  ;;  %869 = vmatprep.mubr.f32.mxu1 %v5071_v16 }
  0xd2   :  { %v699_v54 = vsel %vm697_vm4, %v692_v43, %v694_v52  ;;  %v696_v55 = vpop.permute.xlu0 %695  ;;  %734 = vmatprep.subr.mxu0 %v726_v48  ;;  %v4541_v43 = vrot.slane %v3919_v14, %v4345_v26  ;;  %v3923_v48 = vld [vmem:[%s5062_s1 + $0x7] ss:$8 sm:$0xf] }
  0xd3   :  { %v727_v56 = vmul.f32 %v4464_v47, %v699_v54  ;;  %v698_v58 = vsel %vm697_vm4, %v694_v52, %v696_v55  ;;  %v701_v61 = vsel %vm697_vm4, %v696_v55, %v690_v45  ;;  %v4547_v45 = vrot.slane %v3919_v14, %v4349_v32 }
  0xd4   :  { %v725_v62 = vmul.f32 %v4470_v49, %v701_v61  ;;  %v728_v63 = vmul.f32 %v4473_v51, %v698_v58  ;;  %v4563_v58 = vrot.slane %v3923_v48, %v4347_v27  ;;  %v4582_v14 = vrot.slane %v3923_v48, %v4349_v32 }
  0xd5   :  { %v1036_v5 = vpop.permute.xlu1 %1035 }
  0xd6   :  { %735 = vmatpush1.msra.mxu0 %v725_v62  ;;  %805 = vmatprep.subr.mxu1 %v728_v63  ;;  %v1034_v7 = vpop.permute.xlu0 %1033  ;;  %v3916_v63 = vld [vmem:[%s5063_s2 + $0x28] sm:$0xff] }
  0xd7   :  { %806 = vmatpush1.msra.mxu1 %v727_v56  ;;  %v1041_v8 = vsel %vm1039_vm5, %v1034_v7, %v1036_v5  ;;  %885 = vmatprep.subr.mxu0 %v4278_v24 }
  0xd8   :  { %3910 = vmatmul.mubr.msk.f32.vlgmr.msra.gmra.mrb[0].mxu0 %vm207_vm2, %v3909_v4  ;;  %3911 = vmatmul.mubr.msk.f32.vlgmr.msra.gmra.mrb[0].mxu1 %vm207_vm2, %v3909_v4  ;;  %v1068_v9 = vmul.f32 %v4491_v3, %v1041_v8 }
  0xd9   :  { %956 = vmatprep.subr.mxu1 %v4265_v19  ;;  %886 = vmatpush1.msra.mxu0 %v4268_v21  ;;  %v1038_v24 = vpop.permute.xlu1 %1037 }
  0xda   :  { %949 = vmatprep.mubr.f32.mxu0 %v5071_v16  ;;  %957 = vmatpush1.msra.mxu1 %v4273_v23  ;;  %v1032_v17 = vpop.permute.xlu0 %1031  ;;  %v1040_v19 = vsel %vm1039_vm5, %v1036_v5, %v1038_v24 }
  0xdb   :  { %1020 = vmatprep.mubr.f32.mxu1 %v5071_v16  ;;  %v1042_v21 = vsel %vm1039_vm5, %v1032_v17, %v1034_v7  ;;  %v1043_v22 = vsel %vm1039_vm5, %v1038_v24, %v1032_v17  ;;  %1076 = vmatprep.subr.mxu0 %v1068_v9  ;;  %v1069_v2 = vmul.f32 %v4511_v13, %v1040_v19  ;;  %v3927_v19 = vld [vmem:[%s5062_s1 + $0x20] ss:$8 sm:$0xf] }
  0xdc   :  { %v1070_v0 = vmul.f32 %v4503_v11, %v1043_v22  ;;  %v1067_v23 = vmul.f32 %v4508_v12, %v1042_v21  ;;  %v4576_v9 = vrot.slane %v3923_v48, %v4345_v26  ;;  %v4579_v24 = vrot.slane %v3923_v48, %v4351_v34 }
  0xdd   :  { %v1227_v33 = vpop.permute.xlu1 %1226 }
  0xde   :  { %v1225_v35 = vpop.permute.xlu0 %1224  ;;  %1147 = vmatprep.subr.mxu1 %v1070_v0 }
  0xdf   :  { %v1232_v36 = vsel %vm1230_vm6, %v1225_v35, %v1227_v33 }
  0xe0   :  { %3913 = vmatmul.mubr.msk.f32.vlgmr.msra.gmra.mrb[0].mxu0 %vm207_vm2, %v3912_v6  ;;  %3914 = vmatmul.mubr.msk.f32.vlgmr.msra.gmra.mrb[0].mxu1 %vm207_vm2, %v3912_v6  ;;  %v1259_v40 = vmul.f32 %v4528_v1, %v1232_v36  ;;  %v4598_v6 = vrot.slane %v3927_v19, %v4347_v27  ;;  %v3920_v36 = vld [vmem:[%s5063_s2 + $0x30] sm:$0xff] }
  0xe1   :  { %1077 = vmatpush1.msra.mxu0 %v1067_v23  ;;  %1148 = vmatpush1.msra.mxu1 %v1069_v2  ;;  %v1229_v46 = vpop.permute.xlu1 %1228 }
  0xe2   :  { %1140 = vmatprep.mubr.f32.mxu0 %v5071_v16  ;;  %1211 = vmatprep.mubr.f32.mxu1 %v5071_v16  ;;  %v1223_v52 = vpop.permute.xlu0 %1222  ;;  %v1231_v53 = vsel %vm1230_vm6, %v1227_v33, %v1229_v46 }
  0xe3   :  { %v1233_v54 = vsel %vm1230_vm6, %v1223_v52, %v1225_v35  ;;  %v1234_v55 = vsel %vm1230_vm6, %v1229_v46, %v1223_v52  ;;  %1267 = vmatprep.subr.mxu0 %v1259_v40  ;;  %v1260_v62 = vmul.f32 %v4547_v45, %v1231_v53  ;;  %v4611_v52 = vrot.slane %v3927_v19, %v4345_v26 }
  0xe4   :  { %v1261_v56 = vmul.f32 %v4541_v43, %v1234_v55  ;;  %v1258_v61 = vmul.f32 %v4544_v44, %v1233_v54  ;;  %v4614_v53 = vrot.slane %v3927_v19, %v4351_v34  ;;  %v4617_v54 = vrot.slane %v3927_v19, %v4349_v32 }
  0xe5   :  { %v1418_v4 = vpop.permute.xlu1 %1417 }
  0xe6   :  { %v1416_v5 = vpop.permute.xlu0 %1415  ;;  %1338 = vmatprep.subr.mxu1 %v1261_v56  ;;  %5086 = vst [vmem:[#allocation6_spill] sm:$0xff] %v4617_v54 }
  0xe7   :  { %v1423_v7 = vsel %vm1421_vm7, %v1416_v5, %v1418_v4 }
  0xe8   :  { %3917 = vmatmul.mubr.msk.f32.vlgmr.msra.gmra.mrb[0].mxu0 %vm207_vm2, %v3916_v63  ;;  %3918 = vmatmul.mubr.msk.f32.vlgmr.msra.gmra.mrb[0].mxu1 %vm207_vm2, %v3916_v63  ;;  %v1450_v8 = vmul.f32 %v4563_v58, %v1423_v7 }
  0xe9   :  { %1268 = vmatpush1.msra.mxu0 %v1258_v61  ;;  %1339 = vmatpush1.msra.mxu1 %v1260_v62  ;;  %v1420_v17 = vpop.permute.xlu1 %1419 }
  0xea   :  { %1331 = vmatprep.mubr.f32.mxu0 %v5071_v16  ;;  %1402 = vmatprep.mubr.f32.mxu1 %v5071_v16  ;;  %v1414_v21 = vpop.permute.xlu0 %1413  ;;  %v1422_v22 = vsel %vm1421_vm7, %v1418_v4, %v1420_v17  ;;  %v3924_v4 = vld [vmem:[%s5063_s2 + $0x38] sm:$0xff] }
  0xeb   :  { %v1424_v0 = vsel %vm1421_vm7, %v1414_v21, %v1416_v5  ;;  %v1425_v23 = vsel %vm1421_vm7, %v1420_v17, %v1414_v21  ;;  %1458 = vmatprep.subr.mxu0 %v1450_v8  ;;  %v1451_v35 = vmul.f32 %v4582_v14, %v1422_v22  ;;  %v3928_v5 = vld [vmem:[%s5063_s2 + $0x40] sm:$0xff] }
  0xec   :  { %v1452_v2 = vmul.f32 %v4576_v9, %v1425_v23  ;;  %v1449_v33 = vmul.f32 %v4579_v24, %v1424_v0 }
  0xed   :  { %v1609_v40 = vpop.permute.xlu1 %1608 }
  0xee   :  { %v1607_v46 = vpop.permute.xlu0 %1606  ;;  %1529 = vmatprep.subr.mxu1 %v1452_v2 }
  0xef   :  { %v1614_v48 = vsel %vm1612_vm8, %v1607_v46, %v1609_v40 }
  0xf0   :  { %3921 = vmatmul.mubr.msk.f32.vlgmr.msra.gmra.mrb[0].mxu0 %vm207_vm2, %v3920_v36  ;;  %3922 = vmatmul.mubr.msk.f32.vlgmr.msra.gmra.mrb[0].mxu1 %vm207_vm2, %v3920_v36  ;;  %v1641_v27 = vmul.f32 %v4598_v6, %v1614_v48 }
  0xf1   :  { %1459 = vmatpush1.msra.mxu0 %v1449_v33  ;;  %1530 = vmatpush1.msra.mxu1 %v1451_v35  ;;  %v1611_v55 = vpop.permute.xlu1 %1610 }
  0xf2   :  { %1522 = vmatprep.mubr.f32.mxu0 %v5071_v16  ;;  %1593 = vmatprep.mubr.f32.mxu1 %v5071_v16  ;;  %v1605_v56 = vpop.permute.xlu0 %1604  ;;  %v1613_v61 = vsel %vm1612_vm8, %v1609_v40, %v1611_v55 }
  0xf3   :  { %v1615_v26 = vsel %vm1612_vm8, %v1605_v56, %v1607_v46  ;;  %v1616_v62 = vsel %vm1612_vm8, %v1611_v55, %v1605_v56  ;;  %1649 = vmatprep.subr.mxu0 %v1641_v27  ;;  %v1642_v63 = vmul.f32 %v4617_v54, %v1613_v61 }
  0xf4   :  { %v1643_v34 = vmul.f32 %v4611_v52, %v1616_v62  ;;  %v1640_v32 = vmul.f32 %v4614_v53, %v1615_v26 }
  0xf6   :  { %1720 = vmatprep.subr.mxu1 %v1643_v34 }
  0xf8   :  { %3925 = vmatmul.mubr.msk.f32.vlgmr.msra.gmra.mrb[0].mxu0 %vm207_vm2, %v3924_v4  ;;  %3926 = vmatmul.mubr.msk.f32.vlgmr.msra.gmra.mrb[0].mxu1 %vm207_vm2, %v3924_v4 }
  0xf9   :  { %1650 = vmatpush1.msra.mxu0 %v1640_v32  ;;  %1721 = vmatpush1.msra.mxu1 %v1642_v63 }
  0xfa   :  { %1713 = vmatprep.mubr.f32.mxu0 %v5071_v16  ;;  %1784 = vmatprep.mubr.f32.mxu1 %v5071_v16 }
 0x100   :  { %3929 = vmatmul.mubr.msk.f32.vlgmr.msra.gmra.mrb[0].mxu0 %vm207_vm2, %v3928_v5  ;;  %3930 = vmatmul.mubr.msk.f32.vlgmr.msra.gmra.mrb[0].mxu1 %vm207_vm2, %v3928_v5 }
 0x101   :  { %2162 = vmatprep.mubr.f32.mxu0 %v5071_v16  ;;  %2233 = vmatprep.mubr.f32.mxu1 %v5071_v16 }
 0x103   :  { %v1799_v7 = vpop.permute.xlu0 %1798 }
 0x1d3   :  { %v1715_v8 = vpop.f32.mrb[0].mxu0  ;;  %v1786_v17 = vpop.f32.mrb[0].mxu1 }
 0x1d4   :  { %v1801_v19 = vadd.f32 %v1799_v7, %v1715_v8  ;;  %v4644_v21 = vadd.f32 %v1799_v7, %v1786_v17  ;;  %v1717_v22 = vpop.f32.mrb[1].mxu0  ;;  %v1788_v0 = vpop.f32.mrb[1].mxu1 }
 0x1d5   :  { %v1802_v23 = vadd.f32 %v1799_v7, %v1717_v22  ;;  %v4646_v2 = vadd.f32 %v1799_v7, %v1788_v0 }
 0x1d6   :  { %v1805_v33 = vmul.f32 %v1801_v19, %v1801_v19  ;;  %v1807_v35 = vmul.f32 %v4644_v21, %v4644_v21 }
 0x1d7   :  { %v1806_v36 = vmul.f32 %v1802_v23, %v1802_v23  ;;  %v1808_v40 = vmul.f32 %v4646_v2, %v4646_v2 }
 0x1d8   :  { %v1809_v46 = vrot.slane %v1805_v33, 4  ;;  %v1821_v48 = vrot.slane %v1807_v35, 4 }
 0x1d9   :  { %v1815_v27 = vrot.slane %v1806_v36, 4  ;;  %v1827_v55 = vrot.slane %v1808_v40, 4 }
 0x1da   :  { %v1810_v56 = vadd.f32 %v1809_v46, %v1805_v33  ;;  %v1822_v61 = vadd.f32 %v1821_v48, %v1807_v35 }
 0x1db   :  { %v1816_v26 = vadd.f32 %v1815_v27, %v1806_v36  ;;  %v1828_v62 = vadd.f32 %v1827_v55, %v1808_v40 }
 0x1dc   :  { %v1811_v34 = vrot.slane %v1810_v56, 2  ;;  %v1823_v32 = vrot.slane %v1822_v61, 2 }
 0x1dd   :  { %v1817_v63 = vrot.slane %v1816_v26, 2  ;;  %v1829_v4 = vrot.slane %v1828_v62, 2 }
 0x1de   :  { %v1812_v5 = vadd.f32 %v1811_v34, %v1810_v56  ;;  %v1824_v7 = vadd.f32 %v1823_v32, %v1822_v61 }
 0x1df   :  { %v1818_v8 = vadd.f32 %v1817_v63, %v1816_v26  ;;  %v1830_v17 = vadd.f32 %v1829_v4, %v1828_v62 }
 0x1e0   :  { %v1813_v22 = vrot.slane %v1812_v5, 1  ;;  %v1825_v0 = vrot.slane %v1824_v7, 1 }
 0x1e1   :  { %v1819_v16 = vrot.slane %v1818_v8, 1  ;;  %v1831_v28 = vrot.slane %v1830_v17, 1 }
 0x1e2   :  { %v1814_v30 = vadd.f32 %v1813_v22, %v1812_v5  ;;  %v1826_v31 = vadd.f32 %v1825_v0, %v1824_v7 }
 0x1e3   :  { %v1820_v29 = vadd.f32 %v1819_v16, %v1818_v8  ;;  %v1832_v54 = vadd.f32 %v1831_v28, %v1830_v17 }
 0x1e4   :  { %v1833_v33 = vmax.f32 %v1814_v30, 1e-24  ;;  %v1835_v40 = vmax.f32 %v1826_v31, 1e-24 }
 0x1e5   :  { %v1834_v35 = vmax.f32 %v1820_v29, 1e-24  ;;  %v1836_v36 = vmax.f32 %v1832_v54, 1e-24 }
 0x1e6   :  { %4061 = vrsqrt.f32 %v1833_v33 }
 0x1e7   :  { %4063 = vrsqrt.f32 %v1834_v35 }
 0x1e8   :  { %4065 = vrsqrt.f32 %v1836_v36 }
 0x1e9   :  { %4067 = vrsqrt.f32 %v1835_v40 }
 0x1f0   :  { %v4062_v46 = vpop.eup %4061 }
 0x1f1   :  { %v4064_v48 = vpop.eup %4063  ;;  %v1849_v27 = vmul.f32 4.951719, %v4062_v46  ;;  %v1841_v55 = vmul.f32 %v4062_v46, %v1833_v33 }
 0x1f2   :  { %v4066_v56 = vpop.eup %4065  ;;  %v1842_v61 = vmul.f32 %v4064_v48, %v1834_v35  ;;  %v1850_v26 = vmul.f32 4.951719, %v4064_v48 }
 0x1f3   :  { %v4068_v62 = vpop.eup %4067  ;;  %v1853_v34 = vmul.f32 %v1849_v27, %v1801_v19  ;;  %v1852_v32 = vmul.f32 4.951719, %v4066_v56  ;;  %v1844_v16 = vmul.f32 %v4066_v56, %v1836_v36  ;;  %vm1845_vm9 = vcmp.gt.f32.partialorder %v1841_v55, 4.951719 }
 0x1f4   :  { %vm1846_vm10 = vcmp.gt.f32.partialorder %v1842_v61, 4.951719  ;;  %v1854_v28 = vmul.f32 %v1850_v26, %v1802_v23  ;;  %v1843_v29 = vmul.f32 %v4068_v62, %v1835_v40  ;;  %v1851_v30 = vmul.f32 4.951719, %v4068_v62  ;;  %v1895_v62 = vld [vmem:[%s5065_s4] sm:$0xff] }
 0x1f5   :  { %v1856_v31 = vmul.f32 %v1852_v32, %v4646_v2  ;;  %vm1848_vm11 = vcmp.gt.f32.partialorder %v1844_v16, 4.951719  ;;  %v1865_v54 = vsel %vm1845_vm9, %v1853_v34, %v1801_v19  ;;  %v1906_v19 = vld [vmem:[%s5064_s5] sm:$0xff] }
 0x1f6   :  { %v1866_v63 = vsel %vm1846_vm10, %v1854_v28, %v1802_v23  ;;  %vm1847_vm12 = vcmp.gt.f32.partialorder %v1843_v29, 4.951719  ;;  %v1855_v4 = vmul.f32 %v1851_v30, %v4644_v21  ;;  %v1876_v5 = vmul.f32 %v1865_v54, %v1865_v54 }
 0x1f7   :  { %v1877_v7 = vmul.f32 %v1866_v63, %v1866_v63  ;;  %v1869_v8 = vadd.f32 %v1866_v63, %v1865_v54  ;;  %v1868_v22 = vsel %vm1848_vm11, %v1856_v31, %v4646_v2 }
 0x1f8   :  { %v1867_v17 = vsel %vm1847_vm12, %v1855_v4, %v4644_v21  ;;  %v1879_v40 = vmul.f32 %v1868_v22, %v1868_v22 }
 0x1f9   :  { %v1870_v0 = vadd.f32 %v1869_v8, %v1867_v17  ;;  %v1878_v33 = vmul.f32 %v1867_v17, %v1867_v17  ;;  %v1880_v35 = vadd.f32 %v1877_v7, %v1876_v5 }
 0x1fb   :  { %v1871_v36 = vadd.f32 %v1870_v0, %v1868_v22  ;;  %v1881_v46 = vadd.f32 %v1880_v35, %v1878_v33 }
 0x1fd   :  { %1872 = vadd.xlane.f32.xlu1 %v1871_v36  ;;  %v1882_v48 = vadd.f32 %v1881_v46, %v1879_v40 }
 0x1ff   :  { %1883 = vadd.xlane.f32.xlu0 %v1882_v48 }
 0x215   :  { %1909 = vperm.xlu0 %4035, %v1906_v19  }
 0x28a   :  { %v1873_v23 = vpop.xlane.xlu1 %1872 }
 0x28b   :  { %v1875_v27 = vmul.f32 0.001953125, %v1873_v23 }
 0x28c   :  { %v1884_v55 = vpop.xlane.xlu0 %1883 }
 0x28d   :  { %v1885_v21 = vmul.f32 0.001953125, %v1884_v55  ;;  %v1886_v56 = vmul.f32 %v1875_v27, %v1875_v27  ;;  %v1889_v16 = vsub.f32 %v1865_v54, %v1875_v27  ;;  %v1890_v28 = vsub.f32 %v1866_v63, %v1875_v27 }
 0x28e   :  { %v1891_v29 = vsub.f32 %v1867_v17, %v1875_v27  ;;  %v1892_v30 = vsub.f32 %v1868_v22, %v1875_v27 }
 0x28f   :  { %v1887_v2 = vsub.f32 %v1885_v21, %v1886_v56 }
 0x291   :  { %v1888_v61 = vmax.f32 %v1887_v2, 0.0 }
 0x293   :  { %v1893_v26 = vadd.f32 1e-05, %v1888_v61 }
 0x294   :  { %v1910_v0 = vpop.permute.xlu0 %1909 }
 0x295   :  { %4069 = vrsqrt.f32 %v1893_v26 }
 0x29f   :  { %v4070_v34 = vpop.eup %4069 }
 0x2a0   :  { %v1896_v32 = vmul.f32 %v4070_v34, %v1895_v62 }
 0x2a2   :  { %1899 = vperm.xlu1 %4036, %v1896_v32  }
 0x321   :  { %v1900_v31 = vpop.permute.xlu1 %1899 }
 0x322   :  { %v1902_v4 = vmul.f32 %v1900_v31, %v1889_v16  ;;  %v1903_v5 = vmul.f32 %v1900_v31, %v1890_v28  ;;  %v1904_v7 = vmul.f32 %v1900_v31, %v1891_v29  ;;  %v1905_v8 = vmul.f32 %v1900_v31, %v1892_v30 }
 0x324   :  { %v4662_v33 = vadd.f32 %v1910_v0, %v1902_v4  ;;  %v4664_v35 = vadd.f32 %v1910_v0, %v1903_v5  ;;  %v4666_v36 = vadd.f32 %v1910_v0, %v1904_v7  ;;  %v4668_v40 = vadd.f32 %v1910_v0, %v1905_v8 }
 0x326   :  { %v1916_v54 = vmul.f32 %v4662_v33, %v4662_v33  ;;  %v1917_v63 = vmul.f32 %v4664_v35, %v4664_v35  ;;  %v1918_v17 = vmul.f32 %v4666_v36, %v4666_v36  ;;  %v1919_v22 = vmul.f32 %v4668_v40, %v4668_v40 }
 0x328   :  { %v1920_v46 = vrot.slane %v1916_v54, 4  ;;  %v1926_v48 = vrot.slane %v1917_v63, 4  ;;  %v1932_v19 = vrot.slane %v1918_v17, 4  ;;  %v1938_v23 = vrot.slane %v1919_v22, 4 }
 0x32a   :  { %v1921_v27 = vadd.f32 %v1920_v46, %v1916_v54  ;;  %v1927_v55 = vadd.f32 %v1926_v48, %v1917_v63  ;;  %v1933_v21 = vadd.f32 %v1932_v19, %v1918_v17  ;;  %v1939_v56 = vadd.f32 %v1938_v23, %v1919_v22 }
 0x32c   :  { %v1922_v2 = vrot.slane %v1921_v27, 2  ;;  %v1928_v61 = vrot.slane %v1927_v55, 2  ;;  %v1934_v26 = vrot.slane %v1933_v21, 2  ;;  %v1940_v62 = vrot.slane %v1939_v56, 2 }
 0x32e   :  { %v1923_v34 = vadd.f32 %v1922_v2, %v1921_v27  ;;  %v1929_v32 = vadd.f32 %v1928_v61, %v1927_v55  ;;  %v1935_v16 = vadd.f32 %v1934_v26, %v1933_v21  ;;  %v1941_v28 = vadd.f32 %v1940_v62, %v1939_v56 }
 0x330   :  { %v1924_v29 = vrot.slane %v1923_v34, 1  ;;  %v1930_v30 = vrot.slane %v1929_v32, 1  ;;  %v1936_v31 = vrot.slane %v1935_v16, 1  ;;  %v1942_v4 = vrot.slane %v1941_v28, 1 }
 0x332   :  { %v1925_v5 = vadd.f32 %v1924_v29, %v1923_v34  ;;  %v1931_v7 = vadd.f32 %v1930_v30, %v1929_v32  ;;  %v1937_v8 = vadd.f32 %v1936_v31, %v1935_v16  ;;  %v1943_v0 = vadd.f32 %v1942_v4, %v1941_v28 }
 0x334   :  { %v1944_v54 = vmax.f32 %v1925_v5, 1e-24  ;;  %v1945_v63 = vmax.f32 %v1931_v7, 1e-24  ;;  %v1946_v17 = vmax.f32 %v1937_v8, 1e-24 }
 0x335   :  { %v1947_v22 = vmax.f32 %v1943_v0, 1e-24 }
 0x336   :  { %4071 = vrsqrt.f32 %v1944_v54 }
 0x337   :  { %4073 = vrsqrt.f32 %v1945_v63 }
 0x338   :  { %4075 = vrsqrt.f32 %v1946_v17 }
 0x339   :  { %4077 = vrsqrt.f32 %v1947_v22 }
 0x340   :  { %v4072_v46 = vpop.eup %4071 }
 0x341   :  { %v4074_v48 = vpop.eup %4073  ;;  %v1952_v19 = vmul.f32 %v4072_v46, %v1944_v54 }
 0x342   :  { %v4076_v23 = vpop.eup %4075  ;;  %v1953_v27 = vmul.f32 %v4074_v48, %v1945_v63 }
 0x343   :  { %v4078_v55 = vpop.eup %4077  ;;  %v1954_v21 = vmul.f32 %v4076_v23, %v1946_v17  ;;  %4079 = vtanh.f32 %v1952_v19 }
 0x344   :  { %v1955_v56 = vmul.f32 %v4078_v55, %v1947_v22  ;;  %4081 = vtanh.f32 %v1953_v27 }
 0x345   :  { %4083 = vtanh.f32 %v1954_v21 }
 0x346   :  { %4085 = vtanh.f32 %v1955_v56 }
 0x34d   :  { %v4080_v2 = vpop.eup %4079 }
 0x34e   :  { %v4082_v61 = vpop.eup %4081  ;;  %v1960_v26 = vmin.f32 %v4080_v2, 0.9999 }
 0x34f   :  { %v4084_v62 = vpop.eup %4083  ;;  %v1961_v34 = vmin.f32 %v4082_v61, 0.9999 }
 0x350   :  { %v4086_v32 = vpop.eup %4085  ;;  %v1962_v16 = vmin.f32 %v4084_v62, 0.9999  ;;  %v1964_v28 = vmul.f32 %v4072_v46, %v1960_v26 }
 0x351   :  { %v1963_v29 = vmin.f32 %v4086_v32, 0.9999  ;;  %v1965_v30 = vmul.f32 %v4074_v48, %v1961_v34 }
 0x352   :  { %v1966_v31 = vmul.f32 %v4076_v23, %v1962_v16  ;;  %v1968_v4 = vmul.f32 %v1964_v28, %v4662_v33 }
 0x353   :  { %v1967_v5 = vmul.f32 %v4078_v55, %v1963_v29  ;;  %v1969_v7 = vmul.f32 %v1965_v30, %v4664_v35 }
 0x354   :  { %v1970_v8 = vmul.f32 %v1966_v31, %v4666_v36  ;;  %v4681_v0 = vmax.f32 %v1968_v4, 0.0 }
 0x355   :  { %v1971_v54 = vmul.f32 %v1967_v5, %v4668_v40  ;;  %v4684_v63 = vmax.f32 %v1969_v7, 0.0 }
 0x356   :  { %v4686_v17 = vmax.f32 %v1970_v8, 0.0  ;;  %v1976_v22 = vmul.f32 %v4681_v0, %v4681_v0 }
 0x357   :  { %v4690_v46 = vmax.f32 %v1971_v54, 0.0  ;;  %v1977_v33 = vmul.f32 %v4684_v63, %v4684_v63 }
 0x358   :  { %v1978_v35 = vmul.f32 %v4686_v17, %v4686_v17  ;;  %v1980_v36 = vrot.slane %v1976_v22, 4 }
 0x359   :  { %v1979_v48 = vmul.f32 %v4690_v46, %v4690_v46  ;;  %v1986_v40 = vrot.slane %v1977_v33, 4 }
 0x35a   :  { %v1981_v19 = vadd.f32 %v1980_v36, %v1976_v22  ;;  %v1992_v23 = vrot.slane %v1978_v35, 4 }
 0x35b   :  { %v1987_v27 = vadd.f32 %v1986_v40, %v1977_v33  ;;  %v1998_v55 = vrot.slane %v1979_v48, 4 }
 0x35c   :  { %v1982_v21 = vrot.slane %v1981_v19, 2  ;;  %v1993_v56 = vadd.f32 %v1992_v23, %v1978_v35 }
 0x35d   :  { %v1988_v2 = vrot.slane %v1987_v27, 2  ;;  %v1999_v61 = vadd.f32 %v1998_v55, %v1979_v48 }
 0x35e   :  { %v1983_v26 = vadd.f32 %v1982_v21, %v1981_v19  ;;  %v1994_v62 = vrot.slane %v1993_v56, 2 }
 0x35f   :  { %v1989_v34 = vadd.f32 %v1988_v2, %v1987_v27  ;;  %v2000_v32 = vrot.slane %v1999_v61, 2 }
 0x360   :  { %v1984_v16 = vrot.slane %v1983_v26, 1  ;;  %v1995_v28 = vadd.f32 %v1994_v62, %v1993_v56 }
 0x361   :  { %v1990_v29 = vrot.slane %v1989_v34, 1  ;;  %v2001_v30 = vadd.f32 %v2000_v32, %v1999_v61 }
 0x362   :  { %v1985_v31 = vadd.f32 %v1984_v16, %v1983_v26  ;;  %v1996_v4 = vrot.slane %v1995_v28, 1 }
 0x363   :  { %v1991_v5 = vadd.f32 %v1990_v29, %v1989_v34  ;;  %v2002_v7 = vrot.slane %v2001_v30, 1 }
 0x364   :  { %v1997_v8 = vadd.f32 %v1996_v4, %v1995_v28  ;;  %v2004_v54 = vmax.f32 %v1985_v31, 1e-24 }
 0x365   :  { %v2003_v22 = vadd.f32 %v2002_v7, %v2001_v30  ;;  %v2005_v33 = vmax.f32 %v1991_v5, 1e-24 }
 0x366   :  { %v2006_v36 = vmax.f32 %v1997_v8, 1e-24  ;;  %4087 = vrsqrt.f32 %v2004_v54 }
 0x367   :  { %v2007_v35 = vmax.f32 %v2003_v22, 1e-24  ;;  %4089 = vrsqrt.f32 %v2005_v33 }
 0x368   :  { %4091 = vrsqrt.f32 %v2006_v36 }
 0x369   :  { %4093 = vrsqrt.f32 %v2007_v35 }
 0x370   :  { %v4088_v48 = vpop.eup %4087 }
 0x371   :  { %v4090_v40 = vpop.eup %4089  ;;  %v2012_v19 = vmul.f32 %v4088_v48, %v2004_v54 }
 0x372   :  { %v4092_v23 = vpop.eup %4091  ;;  %v2013_v27 = vmul.f32 %v4090_v40, %v2005_v33 }
 0x373   :  { %v4094_v55 = vpop.eup %4093  ;;  %v2014_v21 = vmul.f32 %v4092_v23, %v2006_v36  ;;  %v3931_v56 = vclamps-f32 %v2012_v19, 0.9999999 }
 0x374   :  { %v2015_v2 = vmul.f32 %v4094_v55, %v2007_v35  ;;  %v3932_v61 = vclamps-f32 %v2013_v27, 0.9999999 }
 0x375   :  { %v3933_v26 = vclamps-f32 %v2014_v21, 0.9999999  ;;  %v2028_v62 = vsub.f32 1.0, %v3931_v56  ;;  %v2024_v29 = vadd.f32 1.0, %v3931_v56 }
 0x376   :  { %v3934_v34 = vclamps-f32 %v2015_v2, 0.9999999  ;;  %v2029_v32 = vsub.f32 1.0, %v3932_v61  ;;  %v2025_v31 = vadd.f32 1.0, %v3932_v61 }
 0x377   :  { %v2030_v16 = vsub.f32 1.0, %v3933_v26  ;;  %4095 = vrcp.f32 %v2028_v62  ;;  %v2026_v5 = vadd.f32 1.0, %v3933_v26 }
 0x378   :  { %v2031_v28 = vsub.f32 1.0, %v3934_v34  ;;  %4097 = vrcp.f32 %v2029_v32  ;;  %v2027_v54 = vadd.f32 1.0, %v3934_v34 }
 0x379   :  { %4099 = vrcp.f32 %v2030_v16 }
 0x37a   :  { %4101 = vrcp.f32 %v2031_v28 }
 0x381   :  { %v4096_v30 = vpop.eup %4095 }
 0x382   :  { %v4098_v4 = vpop.eup %4097  ;;  %v2033_v7 = vmul.f32 %v4096_v30, %v2024_v29 }
 0x383   :  { %v4100_v8 = vpop.eup %4099  ;;  %v2035_v22 = vmul.f32 %v4098_v4, %v2025_v31 }
 0x384   :  { %v4102_v33 = vpop.eup %4101  ;;  %v2037_v36 = vmul.f32 %v4100_v8, %v2026_v5  ;;  %4103 = vlog2.f32 %v2033_v7 }
 0x385   :  { %v2039_v35 = vmul.f32 %v4102_v33, %v2027_v54  ;;  %4105 = vlog2.f32 %v2035_v22  ;;  %v3935_v33 = vld [vmem:[%s5067_s6 + $0x8] sm:$0xff] }
 0x386   :  { %4107 = vlog2.f32 %v2037_v36 }
 0x387   :  { %4109 = vlog2.f32 %v2039_v35 }
 0x38e   :  { %v4104_v19 = vpop.eup %4103 }
 0x38f   :  { %v4106_v27 = vpop.eup %4105  ;;  %v2041_v21 = vmul.f32 0.6931472, %v4104_v19 }
 0x390   :  { %v4108_v2 = vpop.eup %4107  ;;  %v2043_v56 = vmul.f32 0.6931472, %v4106_v27 }
 0x391   :  { %v4110_v62 = vpop.eup %4109  ;;  %v2045_v61 = vmul.f32 0.6931472, %v4108_v2  ;;  %v2048_v32 = vmul.f32 0.5, %v2041_v21  ;;  %v5087_v21 = vmov 0.0  }
 0x392   :  { %v2047_v26 = vmul.f32 0.6931472, %v4110_v62  ;;  %v2049_v16 = vmul.f32 0.5, %v2043_v56 }
 0x393   :  { %v2050_v28 = vmul.f32 0.5, %v2045_v61  ;;  %v2052_v34 = vmul.f32 %v4088_v48, %v2048_v32  ;;  %v2076_v32 = vld [vmem:[%s5067_s6] sm:$0xff] }
 0x394   :  { %v2051_v29 = vmul.f32 0.5, %v2047_v26  ;;  %v2053_v30 = vmul.f32 %v4090_v40, %v2049_v16 }
 0x395   :  { %v2054_v31 = vmul.f32 %v4092_v23, %v2050_v28  ;;  %v4699_v4 = vmul.f32 %v2052_v34, %v4681_v0  ;;  %v3538_v0 = vld [vmem:[%s5066_s7] sm:$0xff] }
 0x396   :  { %v2055_v5 = vmul.f32 %v4094_v55, %v2051_v29  ;;  %v4702_v7 = vmul.f32 %v2053_v30, %v4684_v63 }
 0x397   :  { %v4705_v8 = vmul.f32 %v2054_v31, %v4686_v17  ;;  %2077 = vrot.lane.b32.xlu1 %v4699_v4, %s4158_s21 }
 0x398   :  { %v4710_v54 = vmul.f32 %v2055_v5, %v4690_v46 }
 0x39a   :  { %2083 = vrot.lane.b32.xlu0 %v4710_v54, %s4158_s21 }
 0x39b   :  { %2079 = vrot.lane.b32.xlu1 %v4702_v7, %s4158_s21 }
 0x39e   :  { %2060 = vrot.lane.b32.xlu0 %v4699_v4, %s4159_s22 }
 0x39f   :  { %2081 = vrot.lane.b32.xlu1 %v4705_v8, %s4158_s21 }
 0x3a2   :  { %2066 = vrot.lane.b32.xlu0 %v4710_v54, %s4159_s22 }
 0x3a3   :  { %2062 = vrot.lane.b32.xlu1 %v4702_v7, %s4159_s22 }
 0x3a6   :  { %2385 = vrot.lane.b32.xlu0 %v4699_v4, %s4160_s23 }
 0x3a7   :  { %2064 = vrot.lane.b32.xlu1 %v4705_v8, %s4159_s22 }
 0x3aa   :  { %2391 = vrot.lane.b32.xlu0 %v4710_v54, %s4160_s23 }
 0x3ab   :  { %2387 = vrot.lane.b32.xlu1 %v4702_v7, %s4160_s23 }
 0x3ae   :  { %2552 = vrot.lane.b32.xlu0 %v4699_v4, %s4161_s24 }
 0x3af   :  { %2389 = vrot.lane.b32.xlu1 %v4705_v8, %s4160_s23 }
 0x3b2   :  { %2558 = vrot.lane.b32.xlu0 %v4710_v54, %s4161_s24 }
 0x3b3   :  { %2554 = vrot.lane.b32.xlu1 %v4702_v7, %s4161_s24 }
 0x3b6   :  { %2872 = vrot.lane.b32.xlu0 %v4702_v7, %s4162_s25 }
 0x3b7   :  { %2556 = vrot.lane.b32.xlu1 %v4705_v8, %s4161_s24 }
 0x3ba   :  { %2870 = vrot.lane.b32.xlu0 %v4699_v4, %s4162_s25 }
 0x3bb   :  { %2874 = vrot.lane.b32.xlu1 %v4705_v8, %s4162_s25 }
 0x3be   :  { %3039 = vrot.lane.b32.xlu0 %v4702_v7, %s4163_s26 }
 0x3bf   :  { %2876 = vrot.lane.b32.xlu1 %v4710_v54, %s4162_s25 }
 0x3c2   :  { %3037 = vrot.lane.b32.xlu0 %v4699_v4, %s4163_s26 }
 0x3c3   :  { %3041 = vrot.lane.b32.xlu1 %v4705_v8, %s4163_s26 }
 0x3c6   :  { %3206 = vrot.lane.b32.xlu0 %v4702_v7, %s4164_s27 }
 0x3c7   :  { %3043 = vrot.lane.b32.xlu1 %v4710_v54, %s4163_s26 }
 0x3ca   :  { %3204 = vrot.lane.b32.xlu0 %v4699_v4, %s4164_s27 }
 0x3cb   :  { %3208 = vrot.lane.b32.xlu1 %v4705_v8, %s4164_s27 }
 0x3ce   :  { %3373 = vrot.lane.b32.xlu0 %v4702_v7, %s4165_s28 }
 0x3cf   :  { %3210 = vrot.lane.b32.xlu1 %v4710_v54, %s4164_s27 }
 0x3d2   :  { %3371 = vrot.lane.b32.xlu0 %v4699_v4, %s4165_s28 }
 0x3d3   :  { %3375 = vrot.lane.b32.xlu1 %v4705_v8, %s4165_s28 }
 0x3d6   :  { %3541 = vperm.xlu0 %4035, %v3538_v0   ;;  %v3940_v0 = vld [vmem:[%s5067_s6 + $0x10] sm:$0xff] }
 0x3d7   :  { %3377 = vrot.lane.b32.xlu1 %v4710_v54, %s4165_s28 }
 0x409   :  { %v2078_v63 = vpop.permute.xlu1 %2077 }
 0x40c   :  { %v2084_v17 = vpop.permute.xlu0 %2083 }
 0x40d   :  { %v2088_v46 = vsel %vm173_vm0, %v2084_v17, %v2078_v63  ;;  %v2080_v48 = vpop.permute.xlu1 %2079 }
 0x40e   :  { %v2087_v40 = vsel %vm173_vm0, %v2078_v63, %v2080_v48  ;;  %v2089_v55 = vmul.f32 %v2088_v46, %v4370_v42 }
 0x40f   :  { %v2090_v23 = vmul.f32 %v2087_v40, %v4361_v38 }
 0x410   :  { %v2061_v22 = vpop.permute.xlu0 %2060 }
 0x411   :  { %2098 = vmatprep.subr.mxu0 %v2090_v23  ;;  %v2082_v36 = vpop.permute.xlu1 %2081 }
 0x412   :  { %v2085_v35 = vsel %vm173_vm0, %v2082_v36, %v2084_v17  ;;  %v2086_v19 = vsel %vm173_vm0, %v2080_v48, %v2082_v36  ;;  %2099 = vmatpush1.msra.mxu0 %v2089_v55 }
 0x413   :  { %v2091_v27 = vmul.f32 %v2086_v19, %v4364_v39  ;;  %v2092_v38 = vmul.f32 %v2085_v35, %v4358_v37  ;;  %3936 = vmatmul.mubr.msk.f32.vlgmr.msra.gmra.mrb[2].mxu0 %vm207_vm2, %v3935_v33 }
 0x414   :  { %v2067_v42 = vpop.permute.xlu0 %2066  ;;  %2307 = vmatprep.mubr.f32.mxu0 %v5087_v21 }
 0x415   :  { %v2071_v2 = vsel %vm133_vm1, %v2067_v42, %v2061_v22  ;;  %2169 = vmatprep.subr.mxu1 %v2092_v38  ;;  %v2063_v56 = vpop.permute.xlu1 %2062 }
 0x416   :  { %v2070_v62 = vsel %vm133_vm1, %v2061_v22, %v2063_v56  ;;  %2170 = vmatpush1.msra.mxu1 %v2091_v27  ;;  %v2072_v37 = vmul.f32 %v2071_v2, %v4400_v59 }
 0x417   :  { %v2073_v61 = vmul.f32 %v2070_v62, %v4384_v50  ;;  %3937 = vmatmul.mubr.msk.f32.vlgmr.msra.gmra.mrb[2].mxu1 %vm207_vm2, %v3935_v33  ;;  %v3943_v33 = vld [vmem:[%s5067_s6 + $0x18] sm:$0xff] }
 0x418   :  { %v2386_v39 = vpop.permute.xlu0 %2385  ;;  %2378 = vmatprep.mubr.f32.mxu1 %v5087_v21 }
 0x419   :  { %2243 = vmatprep.subr.mxu0 %v2073_v61  ;;  %v2065_v26 = vpop.permute.xlu1 %2064 }
 0x41a   :  { %v2068_v16 = vsel %vm133_vm1, %v2065_v26, %v2067_v42  ;;  %v2069_v28 = vsel %vm133_vm1, %v2063_v56, %v2065_v26  ;;  %2244 = vmatpush1.msra.mxu0 %v2072_v37  ;;  %v3949_v26 = vld [vmem:[%s5067_s6 + $0x28] sm:$0xff] }
 0x41b   :  { %v2074_v50 = vmul.f32 %v2069_v28, %v4395_v57  ;;  %v2075_v59 = vmul.f32 %v2068_v16, %v4403_v60  ;;  %3938 = vmatmul.mubr.msk.f32.vlgmr.msra.gmra.mrb[2].mxu0 %vm207_vm2, %v2076_v32 }
 0x41c   :  { %v2392_v34 = vpop.permute.xlu0 %2391  ;;  %2470 = vmatprep.mubr.f32.mxu0 %v5087_v21 }
 0x41d   :  { %v2396_v29 = vsel %vm506_vm3, %v2392_v34, %v2386_v39  ;;  %2314 = vmatprep.subr.mxu1 %v2075_v59  ;;  %v2388_v30 = vpop.permute.xlu1 %2387 }
 0x41e   :  { %v2395_v31 = vsel %vm506_vm3, %v2386_v39, %v2388_v30  ;;  %2315 = vmatpush1.msra.mxu1 %v2074_v50  ;;  %v2397_v57 = vmul.f32 %v2396_v29, %v4435_v18 }
 0x41f   :  { %v2398_v5 = vmul.f32 %v2395_v31, %v4421_v10  ;;  %3939 = vmatmul.mubr.msk.f32.vlgmr.msra.gmra.mrb[2].mxu1 %vm207_vm2, %v2076_v32 }
 0x420   :  { %v2553_v60 = vpop.permute.xlu0 %2552  ;;  %2541 = vmatprep.mubr.f32.mxu1 %v5087_v21 }
 0x421   :  { %2406 = vmatprep.subr.mxu0 %v2398_v5  ;;  %v2390_v63 = vpop.permute.xlu1 %2389  ;;  %v3952_v5 = vld [vmem:[%s5067_s6 + $0x30] sm:$0xff] }
 0x422   :  { %v2393_v17 = vsel %vm506_vm3, %v2390_v63, %v2392_v34  ;;  %v2394_v46 = vsel %vm506_vm3, %v2388_v30, %v2390_v63  ;;  %2407 = vmatpush1.msra.mxu0 %v2397_v57 }
 0x423   :  { %v2399_v10 = vmul.f32 %v2394_v46, %v4429_v15  ;;  %v2400_v18 = vmul.f32 %v2393_v17, %v4438_v20  ;;  %3941 = vmatmul.mubr.msk.f32.vlgmr.msra.gmra.mrb[2].mxu0 %vm207_vm2, %v3940_v0 }
 0x424   :  { %v2559_v48 = vpop.permute.xlu0 %2558  ;;  %2637 = vmatprep.mubr.f32.mxu0 %v5087_v21 }
 0x425   :  { %v2563_v40 = vsel %vm697_vm4, %v2559_v48, %v2553_v60  ;;  %2477 = vmatprep.subr.mxu1 %v2400_v18  ;;  %v2555_v23 = vpop.permute.xlu1 %2554 }
 0x426   :  { %v2562_v55 = vsel %vm697_vm4, %v2553_v60, %v2555_v23  ;;  %2478 = vmatpush1.msra.mxu1 %v2399_v10  ;;  %v2564_v15 = vmul.f32 %v2563_v40, %v4470_v49 }
 0x427   :  { %v2565_v22 = vmul.f32 %v2562_v55, %v4456_v41  ;;  %3942 = vmatmul.mubr.msk.f32.vlgmr.msra.gmra.mrb[2].mxu1 %vm207_vm2, %v3940_v0  ;;  %v5088_v55 = vld [vmem:[#allocation6_spill] sm:$0xff] }
 0x428   :  { %v2873_v20 = vpop.permute.xlu0 %2872  ;;  %2708 = vmatprep.mubr.f32.mxu1 %v5087_v21 }
 0x429   :  { %2573 = vmatprep.subr.mxu0 %v2565_v22  ;;  %v2557_v36 = vpop.permute.xlu1 %2556 }
 0x42a   :  { %v2560_v35 = vsel %vm697_vm4, %v2557_v36, %v2559_v48  ;;  %v2561_v19 = vsel %vm697_vm4, %v2555_v23, %v2557_v36  ;;  %2574 = vmatpush1.msra.mxu0 %v2564_v15 }
 0x42b   :  { %v2566_v41 = vmul.f32 %v2561_v19, %v4464_v47  ;;  %v2567_v49 = vmul.f32 %v2560_v35, %v4473_v51  ;;  %3944 = vmatmul.mubr.msk.f32.vlgmr.msra.gmra.mrb[2].mxu0 %vm207_vm2, %v3943_v33  ;;  %2724 = vmatprep.subr.mxu0 %v4702_v7 }
 0x42c   :  { %v2871_v27 = vpop.permute.xlu0 %2870  ;;  %2725 = vmatpush1.msra.mxu0 %v4699_v4  ;;  %2788 = vmatprep.mubr.f32.mxu0 %v5087_v21  ;;  %v3946_v4 = vld [vmem:[%s5067_s6 + $0x20] sm:$0xff] }
 0x42d   :  { %2644 = vmatprep.subr.mxu1 %v2567_v49  ;;  %v2875_v38 = vpop.permute.xlu1 %2874  ;;  %v2880_v47 = vsel %vm1039_vm5, %v2871_v27, %v2873_v20 }
 0x42e   :  { %v2879_v42 = vsel %vm1039_vm5, %v2873_v20, %v2875_v38  ;;  %2645 = vmatpush1.msra.mxu1 %v2566_v41  ;;  %v2882_v56 = vmul.f32 %v2880_v47, %v4508_v12 }
 0x42f   :  { %v2883_v51 = vmul.f32 %v2879_v42, %v4491_v3  ;;  %3945 = vmatmul.mubr.msk.f32.vlgmr.msra.gmra.mrb[2].mxu1 %vm207_vm2, %v3943_v33  ;;  %2795 = vmatprep.subr.mxu1 %v4710_v54 }
 0x430   :  { %v3040_v7 = vpop.permute.xlu0 %3039  ;;  %2796 = vmatpush1.msra.mxu1 %v4705_v8  ;;  %2859 = vmatprep.mubr.f32.mxu1 %v5087_v21 }
 0x431   :  { %2891 = vmatprep.subr.mxu0 %v2883_v51  ;;  %v2877_v2 = vpop.permute.xlu1 %2876 }
 0x432   :  { %v2881_v3 = vsel %vm1039_vm5, %v2877_v2, %v2871_v27  ;;  %v2878_v62 = vsel %vm1039_vm5, %v2875_v38, %v2877_v2 }
 0x433   :  { %v2885_v54 = vmul.f32 %v2881_v3, %v4503_v11  ;;  %3947 = vmatmul.mubr.msk.f32.vlgmr.msra.gmra.mrb[2].mxu0 %vm207_vm2, %v3946_v4  ;;  %v2884_v37 = vmul.f32 %v2878_v62, %v4511_v13 }
 0x434   :  { %v3038_v8 = vpop.permute.xlu0 %3037  ;;  %2892 = vmatpush1.msra.mxu0 %v2882_v56  ;;  %2955 = vmatprep.mubr.f32.mxu0 %v5087_v21 }
 0x435   :  { %2962 = vmatprep.subr.mxu1 %v2885_v54  ;;  %v3042_v61 = vpop.permute.xlu1 %3041  ;;  %v3047_v39 = vsel %vm1230_vm6, %v3038_v8, %v3040_v7 }
 0x436   :  { %v3046_v12 = vsel %vm1230_vm6, %v3040_v7, %v3042_v61  ;;  %v3049_v16 = vmul.f32 %v3047_v39, %v4544_v44 }
 0x437   :  { %v3050_v32 = vmul.f32 %v3046_v12, %v4528_v1  ;;  %3948 = vmatmul.mubr.msk.f32.vlgmr.msra.gmra.mrb[2].mxu1 %vm207_vm2, %v3946_v4 }
 0x438   :  { %v3207_v11 = vpop.permute.xlu0 %3206  ;;  %2963 = vmatpush1.msra.mxu1 %v2884_v37  ;;  %3026 = vmatprep.mubr.f32.mxu1 %v5087_v21 }
 0x439   :  { %3058 = vmatprep.subr.mxu0 %v3050_v32  ;;  %v3044_v13 = vpop.permute.xlu1 %3043 }
 0x43a   :  { %v3048_v28 = vsel %vm1230_vm6, %v3044_v13, %v3038_v8  ;;  %v3045_v1 = vsel %vm1230_vm6, %v3042_v61, %v3044_v13 }
 0x43b   :  { %v3052_v50 = vmul.f32 %v3048_v28, %v4541_v43  ;;  %3950 = vmatmul.mubr.msk.f32.vlgmr.msra.gmra.mrb[2].mxu0 %vm207_vm2, %v3949_v26  ;;  %v3051_v29 = vmul.f32 %v3045_v1, %v4547_v45 }
 0x43c   :  { %v3205_v59 = vpop.permute.xlu0 %3204  ;;  %3059 = vmatpush1.msra.mxu0 %v3049_v16  ;;  %3122 = vmatprep.mubr.f32.mxu0 %v5087_v21 }
 0x43d   :  { %3129 = vmatprep.subr.mxu1 %v3052_v50  ;;  %v3209_v34 = vpop.permute.xlu1 %3208  ;;  %v3214_v30 = vsel %vm1421_vm7, %v3205_v59, %v3207_v11 }
 0x43e   :  { %v3213_v44 = vsel %vm1421_vm7, %v3207_v11, %v3209_v34  ;;  %v3216_v57 = vmul.f32 %v3214_v30, %v4579_v24 }
 0x43f   :  { %v3217_v31 = vmul.f32 %v3213_v44, %v4563_v58  ;;  %3951 = vmatmul.mubr.msk.f32.vlgmr.msra.gmra.mrb[2].mxu1 %vm207_vm2, %v3949_v26 }
 0x440   :  { %v3374_v43 = vpop.permute.xlu0 %3373  ;;  %3130 = vmatpush1.msra.mxu1 %v3051_v29  ;;  %3193 = vmatprep.mubr.f32.mxu1 %v5087_v21 }
 0x441   :  { %3225 = vmatprep.subr.mxu0 %v3217_v31  ;;  %v3211_v45 = vpop.permute.xlu1 %3210 }
 0x442   :  { %v3215_v60 = vsel %vm1421_vm7, %v3211_v45, %v3205_v59  ;;  %v3212_v58 = vsel %vm1421_vm7, %v3209_v34, %v3211_v45 }
 0x443   :  { %v3219_v0 = vmul.f32 %v3215_v60, %v4576_v9  ;;  %3953 = vmatmul.mubr.msk.f32.vlgmr.msra.gmra.mrb[2].mxu0 %vm207_vm2, %v3952_v5  ;;  %v3218_v46 = vmul.f32 %v3212_v58, %v4582_v14  ;;  %v3955_v9 = vld [vmem:[%s5067_s6 + $0x38] sm:$0xff] }
 0x444   :  { %v3372_v63 = vpop.permute.xlu0 %3371  ;;  %3226 = vmatpush1.msra.mxu0 %v3216_v57  ;;  %3289 = vmatprep.mubr.f32.mxu0 %v5087_v21 }
 0x445   :  { %3296 = vmatprep.subr.mxu1 %v3219_v0  ;;  %v3376_v17 = vpop.permute.xlu1 %3375  ;;  %v3381_v10 = vsel %vm1612_vm8, %v3372_v63, %v3374_v43 }
 0x446   :  { %v3380_v24 = vsel %vm1612_vm8, %v3374_v43, %v3376_v17  ;;  %v3383_v14 = vmul.f32 %v3381_v10, %v4614_v53  ;;  %v3958_v53 = vld [vmem:[%s5067_s6 + $0x40] sm:$0xff] }
 0x447   :  { %v3384_v18 = vmul.f32 %v3380_v24, %v4598_v6  ;;  %3954 = vmatmul.mubr.msk.f32.vlgmr.msra.gmra.mrb[2].mxu1 %vm207_vm2, %v3952_v5 }
 0x448   :  { %3297 = vmatpush1.msra.mxu1 %v3218_v46  ;;  %3360 = vmatprep.mubr.f32.mxu1 %v5087_v21 }
 0x449   :  { %3392 = vmatprep.subr.mxu0 %v3384_v18  ;;  %v3378_v48 = vpop.permute.xlu1 %3377 }
 0x44a   :  { %v3382_v40 = vsel %vm1612_vm8, %v3378_v48, %v3372_v63  ;;  %v3379_v23 = vsel %vm1612_vm8, %v3376_v17, %v3378_v48 }
 0x44b   :  { %v3386_v6 = vmul.f32 %v3382_v40, %v4611_v52  ;;  %3956 = vmatmul.mubr.msk.f32.vlgmr.msra.gmra.mrb[2].mxu0 %vm207_vm2, %v3955_v9  ;;  %v3385_v22 = vmul.f32 %v3379_v23, %v5088_v55 }
 0x44c   :  { %3393 = vmatpush1.msra.mxu0 %v3383_v14  ;;  %3456 = vmatprep.mubr.f32.mxu0 %v5087_v21 }
 0x44d   :  { %3463 = vmatprep.subr.mxu1 %v3386_v6 }
 0x44f   :  { %3957 = vmatmul.mubr.msk.f32.vlgmr.msra.gmra.mrb[2].mxu1 %vm207_vm2, %v3955_v9 }
 0x450   :  { %3464 = vmatpush1.msra.mxu1 %v3385_v22  ;;  %3527 = vmatprep.mubr.f32.mxu1 %v5087_v21 }
 0x453   :  { %3959 = vmatmul.mubr.msk.f32.vlgmr.msra.gmra.mrb[2].mxu0 %vm207_vm2, %v3958_v53 }
 0x455   :  { %v3542_v25 = vpop.permute.xlu0 %3541 }
 0x457   :  { %3960 = vmatmul.mubr.msk.f32.vlgmr.msra.gmra.mrb[2].mxu1 %vm207_vm2, %v3958_v53 }
 0x526   :  { %v3458_v52 = vpop.f32.mrb[2].mxu0 }
 0x527   :  { %v3544_v15 = vadd.f32 %v3542_v25, %v3458_v52  ;;  %v3460_v20 = vpop.f32.mrb[3].mxu0 }
 0x528   :  { %v3545_v33 = vadd.f32 %v3542_v25, %v3460_v20 }
 0x529   :  { %v3548_v36 = vmul.f32 %v3544_v15, %v3544_v15 }
 0x52a   :  { %v3549_v35 = vmul.f32 %v3545_v33, %v3545_v33  ;;  %v3529_v19 = vpop.f32.mrb[2].mxu1 }
 0x52b   :  { %v3552_v41 = vrot.slane %v3548_v36, 4  ;;  %v3546_v49 = vadd.f32 %v3542_v25, %v3529_v19  ;;  %v3531_v27 = vpop.f32.mrb[3].mxu1 }
 0x52c   :  { %v3558_v38 = vrot.slane %v3549_v35, 4  ;;  %v3547_v42 = vadd.f32 %v3542_v25, %v3531_v27 }
 0x52d   :  { %v3553_v47 = vadd.f32 %v3552_v41, %v3548_v36  ;;  %v3550_v51 = vmul.f32 %v3546_v49, %v3546_v49 }
 0x52e   :  { %v3559_v21 = vadd.f32 %v3558_v38, %v3549_v35  ;;  %v3551_v7 = vmul.f32 %v3547_v42, %v3547_v42 }
 0x52f   :  { %v3554_v4 = vrot.slane %v3553_v47, 2  ;;  %v3564_v2 = vrot.slane %v3550_v51, 4 }
 0x530   :  { %v3560_v56 = vrot.slane %v3559_v21, 2  ;;  %v3570_v3 = vrot.slane %v3551_v7, 4 }
 0x531   :  { %v3555_v62 = vadd.f32 %v3554_v4, %v3553_v47  ;;  %v3565_v54 = vadd.f32 %v3564_v2, %v3550_v51 }
 0x532   :  { %v3561_v8 = vadd.f32 %v3560_v56, %v3559_v21  ;;  %v3571_v61 = vadd.f32 %v3570_v3, %v3551_v7  ;;  %v3637_v7 = vld [vmem:[%s5069_s8] sm:$0xff] }
 0x533   :  { %v3556_v37 = vrot.slane %v3555_v62, 1  ;;  %v3566_v12 = vrot.slane %v3565_v54, 2 }
 0x534   :  { %v3562_v39 = vrot.slane %v3561_v8, 1  ;;  %v3572_v32 = vrot.slane %v3571_v61, 2 }
 0x535   :  { %v3557_v11 = vadd.f32 %v3556_v37, %v3555_v62  ;;  %v3567_v26 = vadd.f32 %v3566_v12, %v3565_v54 }
 0x536   :  { %v3563_v13 = vadd.f32 %v3562_v39, %v3561_v8  ;;  %v3573_v16 = vadd.f32 %v3572_v32, %v3571_v61 }
 0x537   :  { %v3576_v28 = vmax.f32 %v3557_v11, 1e-24  ;;  %v3568_v1 = vrot.slane %v3567_v26, 1 }
 0x538   :  { %v3577_v50 = vmax.f32 %v3563_v13, 1e-24  ;;  %v3574_v59 = vrot.slane %v3573_v16, 1 }
 0x539   :  { %4111 = vrsqrt.f32 %v3576_v28  ;;  %v3569_v34 = vadd.f32 %v3568_v1, %v3567_v26 }
 0x53a   :  { %4113 = vrsqrt.f32 %v3577_v50  ;;  %v3575_v29 = vadd.f32 %v3574_v59, %v3573_v16 }
 0x53b   :  { %v3578_v44 = vmax.f32 %v3569_v34, 1e-24 }
 0x53c   :  { %v3579_v30 = vmax.f32 %v3575_v29, 1e-24 }
 0x53d   :  { %4115 = vrsqrt.f32 %v3578_v44 }
 0x53e   :  { %4117 = vrsqrt.f32 %v3579_v30 }
 0x543   :  { %v4112_v31 = vpop.eup %4111 }
 0x544   :  { %v4114_v43 = vpop.eup %4113  ;;  %v3584_v5 = vmul.f32 %v4112_v31, %v3576_v28  ;;  %v3592_v45 = vmul.f32 4.951719, %v4112_v31 }
 0x545   :  { %v3585_v57 = vmul.f32 %v4114_v43, %v3577_v50  ;;  %v3593_v60 = vmul.f32 4.951719, %v4114_v43 }
 0x546   :  { %vm3588_vm13 = vcmp.gt.f32.partialorder %v3584_v5, 4.951719  ;;  %v3596_v58 = vmul.f32 %v3592_v45, %v3544_v15 }
 0x547   :  { %v4116_v0 = vpop.eup %4115  ;;  %vm3589_vm14 = vcmp.gt.f32.partialorder %v3585_v57, 4.951719  ;;  %v3597_v63 = vmul.f32 %v3593_v60, %v3545_v33 }
 0x548   :  { %v4118_v17 = vpop.eup %4117  ;;  %v3608_v46 = vsel %vm3588_vm13, %v3596_v58, %v3544_v15  ;;  %v3586_v24 = vmul.f32 %v4116_v0, %v3578_v44  ;;  %v3594_v10 = vmul.f32 4.951719, %v4116_v0 }
 0x549   :  { %v3618_v18 = vmul.f32 %v3608_v46, %v3608_v46  ;;  %v3609_v9 = vsel %vm3589_vm14, %v3597_v63, %v3545_v33  ;;  %v3595_v48 = vmul.f32 4.951719, %v4118_v17  ;;  %v3587_v14 = vmul.f32 %v4118_v17, %v3579_v30  ;;  %v3648_v33 = vld [vmem:[%s5068_s9] sm:$0xff] }
 0x54a   :  { %v3619_v40 = vmul.f32 %v3609_v9, %v3609_v9  ;;  %vm3590_vm15 = vcmp.gt.f32.partialorder %v3586_v24, 4.951719  ;;  %v3598_v23 = vmul.f32 %v3594_v10, %v3546_v49  ;;  %v3612_v6 = vadd.f32 %v3609_v9, %v3608_v46 }
 0x54b   :  { %v3599_v55 = vmul.f32 %v3595_v48, %v3547_v42  ;;  %vm3591_vm0 = vcmp.gt.f32.partialorder %v3587_v14, 4.951719 }
 0x54c   :  { %v3610_v22 = vsel %vm3590_vm15, %v3598_v23, %v3546_v49  ;;  %v3622_v53 = vadd.f32 %v3619_v40, %v3618_v18 }
 0x54d   :  { %v3611_v25 = vsel %vm3591_vm0, %v3599_v55, %v3547_v42  ;;  %v3613_v52 = vadd.f32 %v3612_v6, %v3610_v22  ;;  %v3620_v20 = vmul.f32 %v3610_v22, %v3610_v22 }
 0x54e   :  { %v3621_v36 = vmul.f32 %v3611_v25, %v3611_v25 }
 0x54f   :  { %v3614_v35 = vadd.f32 %v3613_v52, %v3611_v25  ;;  %v3623_v15 = vadd.f32 %v3622_v53, %v3620_v20 }
 0x551   :  { %3615 = vadd.xlane.f32.xlu1 %v3614_v35  ;;  %v3624_v19 = vadd.f32 %v3623_v15, %v3621_v36 }
 0x553   :  { %3625 = vadd.xlane.f32.xlu0 %v3624_v19 }
 0x562   :  { %3651 = vperm.xlu1 %4036, %v3648_v33  }
 0x5de   :  { %v3616_v41 = vpop.xlane.xlu1 %3615 }
 0x5df   :  { %v3617_v27 = vmul.f32 0.001953125, %v3616_v41 }
 0x5e0   :  { %v3626_v38 = vpop.xlane.xlu0 %3625 }
 0x5e1   :  { %v3627_v47 = vmul.f32 0.001953125, %v3626_v38  ;;  %v3628_v49 = vmul.f32 %v3617_v27, %v3617_v27  ;;  %v3631_v56 = vsub.f32 %v3608_v46, %v3617_v27  ;;  %v3632_v3 = vsub.f32 %v3609_v9, %v3617_v27 }
 0x5e2   :  { %v3633_v62 = vsub.f32 %v3610_v22, %v3617_v27  ;;  %v3634_v54 = vsub.f32 %v3611_v25, %v3617_v27  ;;  %v3652_v32 = vpop.permute.xlu1 %3651 }
 0x5e3   :  { %v3629_v51 = vsub.f32 %v3627_v47, %v3628_v49 }
 0x5e5   :  { %v3630_v42 = vmax.f32 %v3629_v51, 0.0 }
 0x5e7   :  { %v3635_v21 = vadd.f32 1e-05, %v3630_v42 }
 0x5e9   :  { %4119 = vrsqrt.f32 %v3635_v21 }
 0x5f3   :  { %v4120_v4 = vpop.eup %4119 }
 0x5f4   :  { %v3638_v2 = vmul.f32 %v4120_v4, %v3637_v7 }
 0x5f6   :  { %3641 = vperm.xlu0 %4035, %v3638_v2  }
 0x675   :  { %v3642_v8 = vpop.permute.xlu0 %3641 }
 0x676   :  { %v3644_v61 = vmul.f32 %v3642_v8, %v3631_v56  ;;  %v3645_v37 = vmul.f32 %v3642_v8, %v3632_v3  ;;  %v3646_v12 = vmul.f32 %v3642_v8, %v3633_v62  ;;  %v3647_v39 = vmul.f32 %v3642_v8, %v3634_v54 }
 0x678   :  { %v4944_v11 = vadd.f32 %v3652_v32, %v3644_v61  ;;  %v4946_v26 = vadd.f32 %v3652_v32, %v3645_v37  ;;  %v4948_v13 = vadd.f32 %v3652_v32, %v3646_v12  ;;  %v4950_v16 = vadd.f32 %v3652_v32, %v3647_v39  ;;  %v4974_v37 = vld [vmem:[%s5060_s0] sm:$0xff] }
 0x67a   :  { %v3658_v28 = vmul.f32 %v4944_v11, %v4944_v11  ;;  %v3659_v1 = vmul.f32 %v4946_v26, %v4946_v26  ;;  %v3660_v50 = vmul.f32 %v4948_v13, %v4948_v13  ;;  %v3661_v59 = vmul.f32 %v4950_v16, %v4950_v16 }
 0x67c   :  { %v3662_v34 = vrot.slane %v3658_v28, 4  ;;  %v3668_v29 = vrot.slane %v3659_v1, 4  ;;  %v3674_v44 = vrot.slane %v3660_v50, 4  ;;  %v3680_v30 = vrot.slane %v3661_v59, 4 }
 0x67e   :  { %v3663_v31 = vadd.f32 %v3662_v34, %v3658_v28  ;;  %v3669_v43 = vadd.f32 %v3668_v29, %v3659_v1  ;;  %v3675_v5 = vadd.f32 %v3674_v44, %v3660_v50  ;;  %v3681_v45 = vadd.f32 %v3680_v30, %v3661_v59  ;;  %v5004_v29 = vld [vmem:[%s5060_s0 + $0x18] sm:$0xff] }
 0x680   :  { %v3664_v57 = vrot.slane %v3663_v31, 2  ;;  %v3670_v60 = vrot.slane %v3669_v43, 2  ;;  %v3676_v58 = vrot.slane %v3675_v5, 2  ;;  %v3682_v0 = vrot.slane %v3681_v45, 2 }
 0x682   :  { %v3665_v63 = vadd.f32 %v3664_v57, %v3663_v31  ;;  %v3671_v17 = vadd.f32 %v3670_v60, %v3669_v43  ;;  %v3677_v46 = vadd.f32 %v3676_v58, %v3675_v5  ;;  %v3683_v24 = vadd.f32 %v3682_v0, %v3681_v45 }
 0x684   :  { %v3666_v10 = vrot.slane %v3665_v63, 1  ;;  %v3672_v18 = vrot.slane %v3671_v17, 1  ;;  %v3678_v9 = vrot.slane %v3677_v46, 1  ;;  %v3684_v48 = vrot.slane %v3683_v24, 1 }
 0x686   :  { %v3667_v14 = vadd.f32 %v3666_v10, %v3665_v63  ;;  %v3673_v40 = vadd.f32 %v3672_v18, %v3671_v17  ;;  %v3679_v23 = vadd.f32 %v3678_v9, %v3677_v46  ;;  %v3685_v6 = vadd.f32 %v3684_v48, %v3683_v24 }
 0x688   :  { %v3686_v55 = vmax.f32 %v3667_v14, 1e-24  ;;  %v3687_v22 = vmax.f32 %v3673_v40, 1e-24  ;;  %v3688_v53 = vmax.f32 %v3679_v23, 1e-24 }
 0x689   :  { %v3689_v25 = vmax.f32 %v3685_v6, 1e-24 }
 0x68a   :  { %4121 = vrsqrt.f32 %v3686_v55 }
 0x68b   :  { %4123 = vrsqrt.f32 %v3687_v22 }
 0x68c   :  { %4125 = vrsqrt.f32 %v3688_v53 }
 0x68d   :  { %4127 = vrsqrt.f32 %v3689_v25 }
 0x694   :  { %v4122_v52 = vpop.eup %4121 }
 0x695   :  { %v4124_v20 = vpop.eup %4123  ;;  %v3694_v36 = vmul.f32 %v4122_v52, %v3686_v55 }
 0x696   :  { %v4126_v35 = vpop.eup %4125  ;;  %v3695_v15 = vmul.f32 %v4124_v20, %v3687_v22 }
 0x697   :  { %v4128_v19 = vpop.eup %4127  ;;  %v3696_v33 = vmul.f32 %v4126_v35, %v3688_v53  ;;  %4129 = vtanh.f32 %v3694_v36 }
 0x698   :  { %v3697_v41 = vmul.f32 %v4128_v19, %v3689_v25  ;;  %4131 = vtanh.f32 %v3695_v15 }
 0x699   :  { %4133 = vtanh.f32 %v3696_v33 }
 0x69a   :  { %4135 = vtanh.f32 %v3697_v41 }
 0x6a1   :  { %v4130_v27 = vpop.eup %4129 }
 0x6a2   :  { %v4132_v38 = vpop.eup %4131  ;;  %v3702_v47 = vmin.f32 %v4130_v27, 0.9999 }
 0x6a3   :  { %v4134_v49 = vpop.eup %4133  ;;  %v3703_v51 = vmin.f32 %v4132_v38, 0.9999 }
 0x6a4   :  { %v4136_v42 = vpop.eup %4135  ;;  %v3704_v21 = vmin.f32 %v4134_v49, 0.9999  ;;  %v3706_v7 = vmul.f32 %v4122_v52, %v3702_v47 }
 0x6a5   :  { %v3705_v4 = vmin.f32 %v4136_v42, 0.9999  ;;  %v3707_v2 = vmul.f32 %v4124_v20, %v3703_v51 }
 0x6a6   :  { %v3708_v56 = vmul.f32 %v4126_v35, %v3704_v21  ;;  %v4961_v3 = vmul.f32 %v3706_v7, %v4944_v11  ;;  %v4986_v11 = vld [vmem:[%s5060_s0 + $0x8] sm:$0xff] }
 0x6a7   :  { %v3709_v62 = vmul.f32 %v4128_v19, %v3705_v4  ;;  %v4964_v54 = vmul.f32 %v3707_v2, %v4946_v26 }
 0x6a8   :  { %v4967_v8 = vmul.f32 %v3708_v56, %v4948_v13  ;;  %v3714_v61 = vmul.f32 %v4961_v3, %v4961_v3  ;;  %v3742_v12 = vmul.f32 %v4974_v37, %v4961_v3 }
 0x6a9   :  { %v4979_v39 = vmul.f32 %v3709_v62, %v4950_v16  ;;  %v3715_v32 = vmul.f32 %v4964_v54, %v4964_v54  ;;  %v3743_v26 = vmul.f32 %v4986_v11, %v4964_v54  ;;  %v4995_v16 = vld [vmem:[%s5060_s0 + $0x10] sm:$0xff] }
 0x6aa   :  { %v3716_v13 = vmul.f32 %v4967_v8, %v4967_v8  ;;  %v3718_v28 = vrot.slane %v3714_v61, 4  ;;  %v3744_v1 = vmul.f32 %v4995_v16, %v4967_v8  ;;  %v3746_v50 = vrot.slane %v3742_v12, 4 }
 0x6ab   :  { %v3717_v59 = vmul.f32 %v4979_v39, %v4979_v39  ;;  %v3724_v34 = vrot.slane %v3715_v32, 4  ;;  %v3745_v44 = vmul.f32 %v5004_v29, %v4979_v39  ;;  %v3752_v30 = vrot.slane %v3743_v26, 4 }
 0x6ac   :  { %v3719_v31 = vadd.f32 %v3718_v28, %v3714_v61  ;;  %v3730_v43 = vrot.slane %v3716_v13, 4  ;;  %v3747_v5 = vadd.f32 %v3746_v50, %v3742_v12  ;;  %v3758_v45 = vrot.slane %v3744_v1, 4 }
 0x6ad   :  { %v3725_v57 = vadd.f32 %v3724_v34, %v3715_v32  ;;  %v3736_v60 = vrot.slane %v3717_v59, 4  ;;  %v3753_v58 = vadd.f32 %v3752_v30, %v3743_v26  ;;  %v3764_v0 = vrot.slane %v3745_v44, 4 }
 0x6ae   :  { %v3720_v63 = vrot.slane %v3719_v31, 2  ;;  %v3731_v17 = vadd.f32 %v3730_v43, %v3716_v13  ;;  %v3748_v46 = vrot.slane %v3747_v5, 2  ;;  %v3759_v24 = vadd.f32 %v3758_v45, %v3744_v1 }
 0x6af   :  { %v3726_v10 = vrot.slane %v3725_v57, 2  ;;  %v3737_v18 = vadd.f32 %v3736_v60, %v3717_v59  ;;  %v3754_v9 = vrot.slane %v3753_v58, 2  ;;  %v3765_v48 = vadd.f32 %v3764_v0, %v3745_v44  ;;  %v5089_v59 = vld [vmem:[#allocation3_spill] sm:$0xff]  ;;  %v5090_v44 = vld [vmem:[#allocation5_spill] sm:$0xff] }
 0x6b0   :  { %v3721_v14 = vadd.f32 %v3720_v63, %v3719_v31  ;;  %v3732_v40 = vrot.slane %v3731_v17, 2  ;;  %v3749_v23 = vadd.f32 %v3748_v46, %v3747_v5  ;;  %v3760_v6 = vrot.slane %v3759_v24, 2  ;;  %v5091_v31 = vld [vmem:[#allocation4_spill] sm:$0xff]  ;;  %v5092_v5 = vld [vmem:[#allocation2_spill] sm:$0xff] }
 0x6b1   :  { %v3727_v55 = vadd.f32 %v3726_v10, %v3725_v57  ;;  %v3738_v22 = vrot.slane %v3737_v18, 2  ;;  %v3755_v53 = vadd.f32 %v3754_v9, %v3753_v58  ;;  %v3766_v25 = vrot.slane %v3765_v48, 2 }
 0x6b2   :  { %v3722_v52 = vrot.slane %v3721_v14, 1  ;;  %v3733_v20 = vadd.f32 %v3732_v40, %v3731_v17  ;;  %v3750_v36 = vrot.slane %v3749_v23, 1  ;;  %v3761_v35 = vadd.f32 %v3760_v6, %v3759_v24 }
 0x6b3   :  { %v3728_v15 = vrot.slane %v3727_v55, 1  ;;  %v3739_v19 = vadd.f32 %v3738_v22, %v3737_v18  ;;  %v3756_v33 = vrot.slane %v3755_v53, 1  ;;  %v3767_v41 = vadd.f32 %v3766_v25, %v3765_v48 }
 0x6b4   :  { %v3734_v27 = vrot.slane %v3733_v20, 1  ;;  %v3751_v38 = vadd.f32 %v3750_v36, %v3749_v23  ;;  %v3762_v47 = vrot.slane %v3761_v35, 1  ;;  %v3723_v4 = vadd.f32 %v3722_v52, %v3721_v14 }
 0x6b5   :  { %v3740_v49 = vrot.slane %v3739_v19, 1  ;;  %v3757_v51 = vadd.f32 %v3756_v33, %v3755_v53  ;;  %v3768_v42 = vrot.slane %v3767_v41, 1  ;;  %v3729_v2 = vadd.f32 %v3728_v15, %v3727_v55 }
 0x6b6   :  { %v3763_v21 = vadd.f32 %v3762_v47, %v3761_v35  ;;  %v3770_v7 = vmul.f32 2.0, %v3751_v38  ;;  %v3735_v61 = vadd.f32 %v3734_v27, %v3733_v20  ;;  %v3798_v34 = vmul.f32 %v3723_v4, %v5089_v59 }
 0x6b7   :  { %v3769_v56 = vadd.f32 %v3768_v42, %v3767_v41  ;;  %v3771_v62 = vmul.f32 2.0, %v3757_v51  ;;  %v3741_v12 = vadd.f32 %v3740_v49, %v3739_v19  ;;  %v3799_v30 = vmul.f32 %v3729_v2, %v5090_v44 }
 0x6b8   :  { %v3772_v32 = vmul.f32 2.0, %v3763_v21  ;;  %v3774_v13 = vadd.f32 1.0, %v3770_v7  ;;  %v3800_v43 = vmul.f32 %v3735_v61, %v5091_v31  ;;  %v3786_v48 = vsub.f32 1.0, %v3723_v4 }
 0x6b9   :  { %v3773_v26 = vmul.f32 2.0, %v3769_v56  ;;  %v3775_v28 = vadd.f32 1.0, %v3771_v62  ;;  %v3801_v45 = vmul.f32 %v3741_v12, %v5092_v5  ;;  %v3787_v40 = vsub.f32 1.0, %v3729_v2 }
 0x6ba   :  { %v3776_v1 = vadd.f32 1.0, %v3772_v32  ;;  %v3802_v57 = vadd.f32 %v3798_v34, %v3774_v13  ;;  %v3778_v10 = vadd.f32 %v3774_v13, %v5089_v59  ;;  %v3788_v6 = vsub.f32 1.0, %v3735_v61 }
 0x6bb   :  { %v3777_v50 = vadd.f32 1.0, %v3773_v26  ;;  %v3803_v60 = vadd.f32 %v3799_v30, %v3775_v28  ;;  %v3779_v18 = vadd.f32 %v3775_v28, %v5090_v44  ;;  %v3789_v22 = vsub.f32 1.0, %v3741_v12 }
 0x6bc   :  { %v3804_v58 = vadd.f32 %v3800_v43, %v3776_v1  ;;  %v3806_v63 = vmax.f32 %v3802_v57, 1e-12  ;;  %v3780_v9 = vadd.f32 %v3776_v1, %v5091_v31  ;;  %v3782_v23 = vmul.f32 %v3778_v10, %v4961_v3 }
 0x6bd   :  { %v3805_v0 = vadd.f32 %v3801_v45, %v3777_v50  ;;  %v3807_v17 = vmax.f32 %v3803_v60, 1e-12  ;;  %v3781_v14 = vadd.f32 %v3777_v50, %v5092_v5  ;;  %v3783_v55 = vmul.f32 %v3779_v18, %v4964_v54 }
 0x6be   :  { %v3808_v46 = vmax.f32 %v3804_v58, 1e-12  ;;  %4137 = vrcp.f32 %v3806_v63  ;;  %v3784_v53 = vmul.f32 %v3780_v9, %v4967_v8  ;;  %v3790_v25 = vmul.f32 %v4974_v37, %v3786_v48 }
 0x6bf   :  { %v3809_v24 = vmax.f32 %v3805_v0, 1e-12  ;;  %4139 = vrcp.f32 %v3807_v17  ;;  %v3785_v52 = vmul.f32 %v3781_v14, %v4979_v39  ;;  %v3791_v20 = vmul.f32 %v4986_v11, %v3787_v40 }
 0x6c0   :  { %4141 = vrcp.f32 %v3808_v46  ;;  %v3792_v36 = vmul.f32 %v4995_v16, %v3788_v6  ;;  %v3794_v35 = vadd.f32 %v3790_v25, %v3782_v23  ;;  %v3793_v19 = vmul.f32 %v5004_v29, %v3789_v22 }
 0x6c1   :  { %4143 = vrcp.f32 %v3809_v24  ;;  %v3795_v33 = vadd.f32 %v3791_v20, %v3783_v55 }
 0x6c2   :  { %v3796_v41 = vadd.f32 %v3792_v36, %v3784_v53  ;;  %v3797_v38 = vadd.f32 %v3793_v19, %v3785_v52 }
 0x6c8   :  { %v4138_v15 = vpop.eup %4137 }
 0x6c9   :  { %v4140_v3 = vpop.eup %4139  ;;  %v5024_v27 = vmul.f32 %v4138_v15, %v3794_v35 }
 0x6ca   :  { %v4142_v54 = vpop.eup %4141  ;;  %v5026_v8 = vmul.f32 %v4140_v3, %v3795_v33 }
 0x6cb   :  { %v4144_v37 = vpop.eup %4143  ;;  %v5028_v47 = vmul.f32 %v4142_v54, %v3796_v41  ;;  %v3818_v39 = vmul.f32 %v5024_v27, %v5024_v27 }
 0x6cc   :  { %v5032_v11 = vmul.f32 %v4144_v37, %v3797_v38  ;;  %v3819_v16 = vmul.f32 %v5026_v8, %v5026_v8 }
 0x6cd   :  { %v3820_v29 = vmul.f32 %v5028_v47, %v5028_v47  ;;  %v3822_v49 = vrot.slane %v3818_v39, 4 }
 0x6ce   :  { %v3821_v51 = vmul.f32 %v5032_v11, %v5032_v11  ;;  %v3828_v42 = vrot.slane %v3819_v16, 4 }
 0x6cf   :  { %v3823_v21 = vadd.f32 %v3822_v49, %v3818_v39  ;;  %v3834_v7 = vrot.slane %v3820_v29, 4 }
 0x6d0   :  { %v3829_v4 = vadd.f32 %v3828_v42, %v3819_v16  ;;  %v3840_v2 = vrot.slane %v3821_v51, 4 }
 0x6d1   :  { %v3824_v56 = vrot.slane %v3823_v21, 2  ;;  %v3835_v62 = vadd.f32 %v3834_v7, %v3820_v29 }
 0x6d2   :  { %v3830_v61 = vrot.slane %v3829_v4, 2  ;;  %v3841_v12 = vadd.f32 %v3840_v2, %v3821_v51 }
 0x6d3   :  { %v3825_v32 = vadd.f32 %v3824_v56, %v3823_v21  ;;  %v3836_v26 = vrot.slane %v3835_v62, 2 }
 0x6d4   :  { %v3831_v13 = vadd.f32 %v3830_v61, %v3829_v4  ;;  %v3842_v28 = vrot.slane %v3841_v12, 2 }
 0x6d5   :  { %v3826_v1 = vrot.slane %v3825_v32, 1  ;;  %v3837_v50 = vadd.f32 %v3836_v26, %v3835_v62 }
 0x6d6   :  { %v3832_v59 = vrot.slane %v3831_v13, 1  ;;  %v3843_v34 = vadd.f32 %v3842_v28, %v3841_v12 }
 0x6d7   :  { %v3827_v44 = vadd.f32 %v3826_v1, %v3825_v32  ;;  %v3838_v30 = vrot.slane %v3837_v50, 1 }
 0x6d8   :  { %v3833_v31 = vadd.f32 %v3832_v59, %v3831_v13  ;;  %v3844_v43 = vrot.slane %v3843_v34, 1 }
 0x6d9   :  { %v3839_v5 = vadd.f32 %v3838_v30, %v3837_v50  ;;  %v3846_v45 = vmax.f32 %v3827_v44, 1e-24 }
 0x6da   :  { %v3845_v57 = vadd.f32 %v3844_v43, %v3843_v34  ;;  %v3847_v60 = vmax.f32 %v3833_v31, 1e-24 }
 0x6db   :  { %v3848_v58 = vmax.f32 %v3839_v5, 1e-24  ;;  %4145 = vrsqrt.f32 %v3846_v45 }
 0x6dc   :  { %v3849_v0 = vmax.f32 %v3845_v57, 1e-24  ;;  %4147 = vrsqrt.f32 %v3847_v60 }
 0x6dd   :  { %4149 = vrsqrt.f32 %v3848_v58 }
 0x6de   :  { %4151 = vrsqrt.f32 %v3849_v0 }
 0x6e5   :  { %v4146_v63 = vpop.eup %4145 }
 0x6e6   :  { %v4148_v17 = vpop.eup %4147  ;;  %v3854_v46 = vmul.f32 %v4146_v63, %v3846_v45  ;;  %v3862_v24 = vmul.f32 0.9999, %v4146_v63 }
 0x6e7   :  { %v4150_v10 = vpop.eup %4149  ;;  %v3855_v18 = vmul.f32 %v4148_v17, %v3847_v60  ;;  %v3863_v9 = vmul.f32 0.9999, %v4148_v17 }
 0x6e8   :  { %v4152_v48 = vpop.eup %4151  ;;  %v3856_v14 = vmul.f32 %v4150_v10, %v3848_v58  ;;  %vm3858_vm1 = vcmp.gt.f32.partialorder %v3854_v46, 0.9999  ;;  %v3864_v40 = vmul.f32 0.9999, %v4150_v10  ;;  %v3866_v23 = vmul.f32 %v3862_v24, %v5024_v27 }
 0x6e9   :  { %v3857_v6 = vmul.f32 %v4152_v48, %v3849_v0  ;;  %vm3859_vm2 = vcmp.gt.f32.partialorder %v3855_v18, 0.9999  ;;  %v3865_v55 = vmul.f32 0.9999, %v4152_v48  ;;  %v3867_v22 = vmul.f32 %v3863_v9, %v5026_v8 }
 0x6ea   :  { %vm3860_vm3 = vcmp.gt.f32.partialorder %v3856_v14, 0.9999  ;;  %v3868_v53 = vmul.f32 %v3864_v40, %v5028_v47  ;;  %v3878_v25 = vsel %vm3858_vm1, %v3866_v23, %v5024_v27 }
 0x6eb   :  { %vm3861_vm4 = vcmp.gt.f32.partialorder %v3857_v6, 0.9999  ;;  %v3869_v52 = vmul.f32 %v3865_v55, %v5032_v11  ;;  %v3879_v20 = vsel %vm3859_vm2, %v3867_v22, %v5026_v8  ;;  %v3882_v36 = vmax.f32 %v3878_v25, 0.0 }
 0x6ec   :  { %v3880_v35 = vsel %vm3860_vm3, %v3868_v53, %v5028_v47  ;;  %v3883_v15 = vmax.f32 %v3879_v20, 0.0 }
 0x6ed   :  { %v3881_v19 = vsel %vm3861_vm4, %v3869_v52, %v5032_v11  ;;  %v3884_v33 = vmax.f32 %v3880_v35, 0.0  ;;  %3886 = vst [vmem:[%s5070_s10] sm:$0xff] %v3882_v36 }
 0x6ee   :  { %v3885_v3 = vmax.f32 %v3881_v19, 0.0  ;;  %3887 = vst [vmem:[%s5070_s10 + $0x8] sm:$0xff] %v3883_v15 }
 0x6ef   :  { %3888 = vst [vmem:[%s5070_s10 + $0x10] sm:$0xff] %v3884_v33 }
 0x6f0   :  { %3889 = vst [vmem:[%s5070_s10 + $0x18] sm:$0xff] %v3885_v3 }

</bundles_post_ra>
